<compile_context>
chip_gen: v7x
topology: tpu7x:2x2x1
jax: 0.10.0
libtpu: 0.0.40
codegen_flags: <defaults>
</compile_context>

<pallas_src>
import functools

import jax
import jax.numpy as jnp
import numpy as np
from jax.experimental import pallas as pl
from jax.experimental.pallas import tpu as pltpu

TM = 1024                       # rows (N*Do*Ho*Wo) per grid step
VMEM_LIMIT = 32 * 1024 * 1024   # valid on v5e/v6e (128 MiB phys) and v7x (64 MiB phys)


# ----------------------------- Pallas kernels ------------------------------

def conv_gemm_stats_kernel(a_ref, w_ref, y_ref, stats_ref):
    """y = A @ W (bf16 in, f32 MXU accumulate) + fused per-tile BN partial sums.

    stats block is (8, Cout): row 0 = sum over this tile's rows, row 1 = sum of
    squares, rows 2..7 = 0.  Every grid step writes its own disjoint block, so
    the row axis stays 'parallel' (megacore-safe); the partials are reduced
    outside the kernel (num_tiles*Cout floats — negligible).
    """
    acc = jnp.dot(a_ref[...], w_ref[...], preferred_element_type=jnp.float32)
    y_ref[...] = acc
    s1 = jnp.sum(acc, axis=0, keepdims=True)          # (1, Cout)
    s2 = jnp.sum(acc * acc, axis=0, keepdims=True)    # (1, Cout)
    row = jax.lax.broadcasted_iota(jnp.int32, stats_ref.shape, 0)
    stats_ref[...] = jnp.where(row == 0, s1, jnp.where(row == 1, s2, 0.0))


def conv_gemm_bias_kernel(a_ref, w_ref, b_ref, y_ref):
    """y = A @ W + bias (with_bn=False path)."""
    acc = jnp.dot(a_ref[...], w_ref[...], preferred_element_type=jnp.float32)
    y_ref[...] = acc + b_ref[...]


def bn_apply_kernel(y_ref, scale_ref, shift_ref, o_ref):
    """Elementwise normalize (f32): o = y * scale + shift, scale/shift broadcast."""
    o_ref[...] = y_ref[...] * scale_ref[...] + shift_ref[...]


# ------------------------------- host glue ---------------------------------

def _im2col_3d(x, k, stride, padding, dilation):
    """x: (N, Cin, D, H, W) -> (M, K) patch matrix, K ordered (Cin, kD, kH, kW)."""
    N, Cin, D, H, W = x.shape
    s, p, d = stride, padding, dilation
    Do = (D + 2 * p - d * (k - 1) - 1) // s + 1
    Ho = (H + 2 * p - d * (k - 1) - 1) // s + 1
    Wo = (W + 2 * p - d * (k - 1) - 1) // s + 1
    xp = jnp.pad(x, ((0, 0), (0, 0), (p, p), (p, p), (p, p)))
    cols = []
    for kd in range(k):
        for kh in range(k):
            for kw in range(k):
                sl = xp[:, :,
                        kd * d: kd * d + s * (Do - 1) + 1: s,
                        kh * d: kh * d + s * (Ho - 1) + 1: s,
                        kw * d: kw * d + s * (Wo - 1) + 1: s]
                cols.append(sl)
    patches = jnp.stack(cols, axis=-1)                    # (N, Cin, Do, Ho, Wo, k^3)
    patches = jnp.transpose(patches, (0, 2, 3, 4, 1, 5))  # (N, Do, Ho, Wo, Cin, k^3)
    return patches.reshape(N * Do * Ho * Wo, Cin * k * k * k), (Do, Ho, Wo)


@functools.partial(jax.jit,
                   static_argnames=("stride", "padding", "dilation", "eps", "with_bn"))
def conv3d_batchnorm(x, weight, bias, gamma, beta, *,
                     stride=1, padding=1, dilation=1, eps=1e-5, with_bn=True):
    """Forward pass of conv3DBatchNorm.  x: NCDHW float32; returns NCDHW float32."""
    N, Cin, D, H, W = x.shape
    Cout = weight.shape[0]
    k = weight.shape[2]

    # im2col in bf16 (MXU-native operand dtype; halves A's HBM footprint/traffic).
    A, (Do, Ho, Wo) = _im2col_3d(x.astype(jnp.bfloat16), k, stride, padding, dilation)
    M, K = A.shape
    nt = -(-M // TM)                       # ceil-div: number of row tiles
    Mp = nt * TM
    if Mp != M:                            # zero-padded rows contribute 0 to the stats
        A = jnp.pad(A, ((0, Mp - M), (0, 0)))

    W2 = weight.reshape(Cout, K).T.astype(jnp.bfloat16)   # (K, Cout), Cin-major

    params = pltpu.CompilerParams(dimension_semantics=("parallel",),
                                  vmem_limit_bytes=VMEM_LIMIT)

    if with_bn:
        # Bias is exactly cancelled by BatchNorm (shifts the mean only) -> skipped.
        y, stats = pl.pallas_call(
            conv_gemm_stats_kernel,
            out_shape=(jax.ShapeDtypeStruct((Mp, Cout), jnp.float32),
                       jax.ShapeDtypeStruct((nt * 8, Cout), jnp.float32)),
            grid_spec=pltpu.PrefetchScalarGridSpec(
                num_scalar_prefetch=0,
                grid=(nt,),
                in_specs=[pl.BlockSpec((TM, K), lambda i: (i, 0)),
                          pl.BlockSpec((K, Cout), lambda i: (0, 0))],
                out_specs=(pl.BlockSpec((TM, Cout), lambda i: (i, 0)),
                           pl.BlockSpec((8, Cout), lambda i: (i, 0)))),
            compiler_params=params,
        )(A, W2)

        stats = stats.reshape(nt, 8, Cout)
        ssum = jnp.sum(stats[:, 0, :], axis=0)             # (Cout,)
        ssq = jnp.sum(stats[:, 1, :], axis=0)              # (Cout,)
        mean = ssum / M
        var = ssq / M - mean * mean                        # biased var (BN train-mode)
        inv = jax.lax.rsqrt(var + eps)
        scale = gamma * inv                                # (Cout,)
        shift = beta - mean * scale                        # (Cout,)

        if 128 % Cout == 0 and (TM * Cout) % 128 == 0:
            # Lane-dense normalize: (Mp, Cout) row-major == (Mp*Cout/128, 128) bytes,
            # so the reshape is free; lane l holds channel l % Cout, so tile
            # scale/shift across the 128 lanes.  Full-lane unmasked vst + in-place.
            rep = 128 // Cout
            tf = TM * Cout // 128
            y_flat = y.reshape(Mp * Cout // 128, 128)
            scale_l = jnp.tile(scale.reshape(1, Cout), (1, rep))
            shift_l = jnp.tile(shift.reshape(1, Cout), (1, rep))
            y_flat = pl.pallas_call(
                bn_apply_kernel,
                out_shape=jax.ShapeDtypeStruct(y_flat.shape, jnp.float32),
                grid_spec=pltpu.PrefetchScalarGridSpec(
                    num_scalar_prefetch=0,
                    grid=(nt,),
                    in_specs=[pl.BlockSpec((tf, 128), lambda i: (i, 0)),
                              pl.BlockSpec((1, 128), lambda i: (0, 0)),
                              pl.BlockSpec((1, 128), lambda i: (0, 0))],
                    out_specs=pl.BlockSpec((tf, 128), lambda i: (i, 0))),
                compiler_params=params,
                input_output_aliases={0: 0},               # normalize y in place
            )(y_flat, scale_l, shift_l)
            y = y_flat.reshape(Mp, Cout)
        else:
            # Fallback layout for channel counts that don't divide 128.
            y = pl.pallas_call(
                bn_apply_kernel,
                out_shape=jax.ShapeDtypeStruct((Mp, Cout), jnp.float32),
                grid_spec=pltpu.PrefetchScalarGridSpec(
                    num_scalar_prefetch=0,
                    grid=(nt,),
                    in_specs=[pl.BlockSpec((TM, Cout), lambda i: (i, 0)),
                              pl.BlockSpec((1, Cout), lambda i: (0, 0)),
                              pl.BlockSpec((1, Cout), lambda i: (0, 0))],
                    out_specs=pl.BlockSpec((TM, Cout), lambda i: (i, 0))),
                compiler_params=params,
                input_output_aliases={0: 0},
            )(y, scale.reshape(1, Cout), shift.reshape(1, Cout))
    else:
        y = pl.pallas_call(
            conv_gemm_bias_kernel,
            out_shape=jax.ShapeDtypeStruct((Mp, Cout), jnp.float32),
            grid_spec=pltpu.PrefetchScalarGridSpec(
                num_scalar_prefetch=0,
                grid=(nt,),
                in_specs=[pl.BlockSpec((TM, K), lambda i: (i, 0)),
                          pl.BlockSpec((K, Cout), lambda i: (0, 0)),
                          pl.BlockSpec((1, Cout), lambda i: (0, 0))],
                out_specs=pl.BlockSpec((TM, Cout), lambda i: (i, 0))),
            compiler_params=params,
        )(A, W2, bias.reshape(1, Cout))

    y = y[:M].reshape(N, Do, Ho, Wo, Cout)
    return jnp.transpose(y, (0, 4, 1, 2, 3))


# ------------------------------ pure-JAX ref --------------------------------

def reference(x, weight, bias, gamma, beta, stride, padding, dilation, eps, with_bn):
    y = jax.lax.conv_general_dilated(
        x, weight, window_strides=(stride,) * 3,
        padding=[(padding, padding)] * 3,
        rhs_dilation=(dilation,) * 3,
        dimension_numbers=("NCDHW", "OIDHW", "NCDHW"))
    y = y + bias.reshape(1, -1, 1, 1, 1)
    if with_bn:
        mean = y.mean(axis=(0, 2, 3, 4), keepdims=True)
        var = ((y - mean) ** 2).mean(axis=(0, 2, 3, 4), keepdims=True)
        y = ((y - mean) * jax.lax.rsqrt(var + eps)
             * gamma.reshape(1, -1, 1, 1, 1) + beta.reshape(1, -1, 1, 1, 1))
    return y


if __name__ == "__main__":
    # conv3DBatchNorm(in_channels=4, n_filters=8, k_size=3, stride=1,
    #                 padding=1, bias=True, dilation=1, with_bn=True)
    N, Cin, Cout, D, H, W, K = 2, 4, 8, 16, 16, 16, 3
    stride, padding, dilation, eps = 1, 1, 1, 1e-5

    key = jax.random.PRNGKey(0)
    kx, kw, kb = jax.random.split(key, 3)
    x = jax.random.normal(kx, (N, Cin, D, H, W), dtype=jnp.float32)
    weight = jax.random.normal(kw, (Cout, Cin, K, K, K), dtype=jnp.float32) * 0.1
    bias = jax.random.normal(kb, (Cout,), dtype=jnp.float32) * 0.1
    gamma = jnp.ones((Cout,), dtype=jnp.float32)    # BatchNorm3d default init
    beta = jnp.zeros((Cout,), dtype=jnp.float32)

    # Tolerance reflects bf16 quantization of the GEMM operands (f32 accumulation).
    TOL = 2e-2

    out = conv3d_batchnorm(x, weight, bias, gamma, beta,
                           stride=stride, padding=padding, dilation=dilation,
                           eps=eps, with_bn=True)
    out = jax.block_until_ready(out)
    ref = reference(x, weight, bias, gamma, beta, stride, padding, dilation,
                    eps, with_bn=True)
    np.testing.assert_allclose(np.asarray(out), np.asarray(ref), rtol=TOL, atol=TOL)

    out_nobn = conv3d_batchnorm(x, weight, bias, gamma, beta,
                                stride=stride, padding=padding, dilation=dilation,
                                eps=eps, with_bn=False)
    out_nobn = jax.block_until_ready(out_nobn)
    ref_nobn = reference(x, weight, bias, gamma, beta, stride, padding, dilation,
                         eps, with_bn=False)
    np.testing.assert_allclose(np.asarray(out_nobn), np.asarray(ref_nobn),
                               rtol=TOL, atol=TOL)

    print("KERNEL_OK")
</pallas_src>

<mosaic_0001>
module attributes {stable_mosaic.version = 11 : i64} {
  func.func @conv_gemm_stats_kernel(%arg0: i32, %arg1: memref<1024x108xbf16, #tpu.memory_space<vmem>>, %arg2: memref<108x8xbf16, #tpu.memory_space<vmem>>, %arg3: memref<1024x8xf32, #tpu.memory_space<vmem>>, %arg4: memref<8x8xf32, #tpu.memory_space<vmem>>) attributes {dimension_semantics = [#tpu.dimension_semantics<parallel>], iteration_bounds = array<i64: 8>, scalar_prefetch = 0 : i64, scratch_operands = 0 : i64, tpu.core_type = #tpu.core_type<tc>, window_params = [{transform_indices = @transform_0, window_bounds = array<i64: 1024, 108>}, {pipeline_mode = #tpu.pipeline_mode<synchronous>, transform_indices = @transform_1, window_bounds = array<i64: 108, 8>}, {transform_indices = @transform_2, window_bounds = array<i64: 1024, 8>}, {transform_indices = @transform_3, window_bounds = array<i64: 8, 8>}]} {
    %c0 = arith.constant 0 : index
    %c0_0 = arith.constant 0 : index
    %0 = vector.load %arg1[%c0, %c0_0] : memref<1024x108xbf16, #tpu.memory_space<vmem>>, vector<1024x108xbf16>
    %c0_1 = arith.constant 0 : index
    %c0_2 = arith.constant 0 : index
    %1 = vector.load %arg2[%c0_1, %c0_2] : memref<108x8xbf16, #tpu.memory_space<vmem>>, vector<108x8xbf16>
    %cst = arith.constant dense<0.000000e+00> : vector<1024x8xf32>
    %2 = tpu.matmul %0, %1, %cst {dimension_numbers = #tpu.dot_dimension_numbers<[1], [0], [0], [1], [0, 0, 1, 1], [], []>} : vector<1024x108xbf16>, vector<108x8xbf16>, vector<1024x8xf32> -> vector<1024x8xf32>
    %c0_3 = arith.constant 0 : index
    %c0_4 = arith.constant 0 : index
    %3 = vector.load %arg3[%c0_3, %c0_4] : memref<1024x8xf32, #tpu.memory_space<vmem>>, vector<1024x8xf32>
    tpu.vector_store %arg3[%c0_3, %c0_4], %2 {strides = array<i32>} : memref<1024x8xf32, #tpu.memory_space<vmem>>, vector<1024x8xf32>,
    %cst_5 = arith.constant dense<0.000000e+00> : vector<8xf32>
    %4 = vector.multi_reduction <add>, %2, %cst_5 [0] : vector<1024x8xf32> to vector<8xf32>
    %5 = vector.shape_cast %4 : vector<8xf32> to vector<1x8xf32>
    %6 = arith.mulf %2, %2 : vector<1024x8xf32>
    %cst_6 = arith.constant dense<0.000000e+00> : vector<8xf32>
    %7 = vector.multi_reduction <add>, %6, %cst_6 [0] : vector<1024x8xf32> to vector<8xf32>
    %8 = vector.shape_cast %7 : vector<8xf32> to vector<1x8xf32>
    %9 = tpu.iota {dimensions = array<i32: 0>} : vector<8x8xi32>
    %c0_i32 = arith.constant 0 : i32
    %10 = vector.broadcast %c0_i32 : i32 to vector<8x8xi32>
    %11 = arith.cmpi eq, %9, %10 : vector<8x8xi32>
    %c1_i32 = arith.constant 1 : i32
    %12 = vector.broadcast %c1_i32 : i32 to vector<8x8xi32>
    %13 = arith.cmpi eq, %9, %12 : vector<8x8xi32>
    %cst_7 = arith.constant 0.000000e+00 : f32
    %14 = vector.shape_cast %8 : vector<1x8xf32> to vector<1x8xf32>
    %15 = vector.broadcast %14 : vector<1x8xf32> to vector<8x8xf32>
    %16 = vector.broadcast %cst_7 : f32 to vector<8x8xf32>
    %17 = arith.select %13, %15, %16 : vector<8x8xi1>, vector<8x8xf32>
    %18 = vector.shape_cast %5 : vector<1x8xf32> to vector<1x8xf32>
    %19 = vector.broadcast %18 : vector<1x8xf32> to vector<8x8xf32>
    %20 = arith.select %11, %19, %17 : vector<8x8xi1>, vector<8x8xf32>
    %c0_8 = arith.constant 0 : index
    %c0_9 = arith.constant 0 : index
    %21 = vector.load %arg4[%c0_8, %c0_9] : memref<8x8xf32, #tpu.memory_space<vmem>>, vector<8x8xf32>
    tpu.vector_store %arg4[%c0_8, %c0_9], %20 {strides = array<i32>} : memref<8x8xf32, #tpu.memory_space<vmem>>, vector<8x8xf32>,
    return
  }
  func.func @transform_0(%arg0: i32) -> (i32, i32) {
    %c0_i32 = arith.constant 0 : i32
    %c0_i32_0 = arith.constant 0 : i32
    return %arg0, %c0_i32 : i32, i32
  }
  func.func @transform_1(%arg0: i32) -> (i32, i32) {
    %c0_i32 = arith.constant 0 : i32
    %c0_i32_0 = arith.constant 0 : i32
    %c0_i32_1 = arith.constant 0 : i32
    return %c0_i32, %c0_i32_0 : i32, i32
  }
  func.func @transform_2(%arg0: i32) -> (i32, i32) {
    %c0_i32 = arith.constant 0 : i32
    %c0_i32_0 = arith.constant 0 : i32
    return %arg0, %c0_i32 : i32, i32
  }
  func.func @transform_3(%arg0: i32) -> (i32, i32) {
    %c0_i32 = arith.constant 0 : i32
    %c0_i32_0 = arith.constant 0 : i32
    return %arg0, %c0_i32 : i32, i32
  }
}

module attributes {stable_mosaic.version = 11 : i64} {
  func.func @bn_apply_kernel(%arg0: i32, %arg1: memref<64x128xf32, #tpu.memory_space<vmem>>, %arg2: memref<1x128xf32, #tpu.memory_space<vmem>>, %arg3: memref<1x128xf32, #tpu.memory_space<vmem>>, %arg4: memref<64x128xf32, #tpu.memory_space<vmem>>) attributes {dimension_semantics = [#tpu.dimension_semantics<parallel>], iteration_bounds = array<i64: 8>, scalar_prefetch = 0 : i64, scratch_operands = 0 : i64, tpu.core_type = #tpu.core_type<tc>, window_params = [{transform_indices = @transform_0, window_bounds = array<i64: 64, 128>}, {pipeline_mode = #tpu.pipeline_mode<synchronous>, transform_indices = @transform_1, window_bounds = array<i64: 1, 128>}, {pipeline_mode = #tpu.pipeline_mode<synchronous>, transform_indices = @transform_2, window_bounds = array<i64: 1, 128>}, {transform_indices = @transform_3, window_bounds = array<i64: 64, 128>}]} {
    %c0 = arith.constant 0 : index
    %c0_0 = arith.constant 0 : index
    %0 = vector.load %arg1[%c0, %c0_0] : memref<64x128xf32, #tpu.memory_space<vmem>>, vector<64x128xf32>
    %c0_1 = arith.constant 0 : index
    %c0_2 = arith.constant 0 : index
    %1 = vector.load %arg2[%c0_1, %c0_2] : memref<1x128xf32, #tpu.memory_space<vmem>>, vector<1x128xf32>
    %2 = vector.broadcast %1 : vector<1x128xf32> to vector<64x128xf32>
    %3 = arith.mulf %0, %2 : vector<64x128xf32>
    %c0_3 = arith.constant 0 : index
    %c0_4 = arith.constant 0 : index
    %4 = vector.load %arg3[%c0_3, %c0_4] : memref<1x128xf32, #tpu.memory_space<vmem>>, vector<1x128xf32>
    %5 = vector.broadcast %4 : vector<1x128xf32> to vector<64x128xf32>
    %6 = arith.addf %3, %5 : vector<64x128xf32>
    %c0_5 = arith.constant 0 : index
    %c0_6 = arith.constant 0 : index
    %7 = vector.load %arg4[%c0_5, %c0_6] : memref<64x128xf32, #tpu.memory_space<vmem>>, vector<64x128xf32>
    tpu.vector_store %arg4[%c0_5, %c0_6], %6 {strides = array<i32>} : memref<64x128xf32, #tpu.memory_space<vmem>>, vector<64x128xf32>,
    return
  }
  func.func @transform_0(%arg0: i32) -> (i32, i32) {
    %c0_i32 = arith.constant 0 : i32
    %c0_i32_0 = arith.constant 0 : i32
    return %arg0, %c0_i32 : i32, i32
  }
  func.func @transform_1(%arg0: i32) -> (i32, i32) {
    %c0_i32 = arith.constant 0 : i32
    %c0_i32_0 = arith.constant 0 : i32
    %c0_i32_1 = arith.constant 0 : i32
    return %c0_i32, %c0_i32_0 : i32, i32
  }
  func.func @transform_2(%arg0: i32) -> (i32, i32) {
    %c0_i32 = arith.constant 0 : i32
    %c0_i32_0 = arith.constant 0 : i32
    %c0_i32_1 = arith.constant 0 : i32
    return %c0_i32, %c0_i32_0 : i32, i32
  }
  func.func @transform_3(%arg0: i32) -> (i32, i32) {
    %c0_i32 = arith.constant 0 : i32
    %c0_i32_0 = arith.constant 0 : i32
    return %arg0, %c0_i32 : i32, i32
  }
}

</mosaic_0001>

<bundles_post_ra>
// kernel: conv3d_batchnorm.2
= control target key start
LH: loop header
LB: loop body
LE: loop exit
PB: predicated region body
PF: predicated region fallthrough
CT: control target
= control target key end

     0   :  { %s2787_s12 = smov 0   ;;  %s3866_s0 = inlined_call_operand.vmem [shape: bf16[8192,108], index: 0, kind: input, shape index: {}]   ;;  %s3867_s1 = inlined_call_operand.vmem [shape: bf16[108,8], index: 1, kind: input, shape index: {}]   ;;  %s3868_s2 = inlined_call_operand.vmem [shape: f32[8192,8], index: 2, kind: output, shape index: {0}]   ;;  %s3869_s3 = inlined_call_operand.vmem [shape: f32[64,8], index: 3, kind: output, shape index: {1}]  }
   0x1 LB: > { %s2793_s13 = sadd.s32 4294967295, %s2765_s12   ;;  %p2308_p0 = scmp.ge.s32.totalorder %s2765_s12, 1  ;;  %s2765_s12 = sphi %s2787_s12, %s14_s12  }
   0x2   : > { %p141_p1 = scmp.lt.s32.totalorder %s2765_s12, 9 }
   0x4   : > { %p142_p2 = pnand %p2308_p0, %p141_p1 }
   0x6   : > { %145 = sbr.rel (%p142_p2) target bundleno = 529 (0x211), region = 28 }
   0xd   : > { %v2688_v0 = vld [vmem:[%s3867_s1] sm:$0xff]   ;;  %v2689_v1 = vld [vmem:[%s3867_s1 + $0x8] sm:$0xff]   ;;  %s2309_s18 = sshll.u32 %s2793_s13, 7  ;;  %v2690_v2 = vld [vmem:[%s3867_s1 + $0x10] sm:$0xff]   ;;  %vm689_vm0 = vcmask 883712   ;;  %vm882_vm1 = vcmask 1045504  }
   0xe   : > { %2522 = vmatprep.subr.bf16.mxu0 %v2688_v0  ;;  %p170_p3 = scmp.lt.s32.totalorder %s2309_s18, 1023  ;;  %2664 = vmatprep.subr.bf16.mxu1 %v2688_v0  ;;  %v2691_v3 = vld [vmem:[%s3867_s1 + $0x18] sm:$0xff]   ;;  %v2692_v5 = vld [vmem:[%s3867_s1 + $0x20] sm:$0xff]   ;;  %v2693_v6 = vld [vmem:[%s3867_s1 + $0x28] sm:$0xff]   ;;  %vm1431_vm2 = vcmask 64512   ;;  %p181_p4 = scmp.lt.s32.totalorder %s2793_s13, 7 }
   0xf   : > { %2523 = vmatpush3.bf16.msra.mxu0 %v2688_v0  ;;  %2671 = vmatpush3.bf16.msra.mxu1 %v2688_v0  ;;  %v2694_v7 = vld [vmem:[%s3867_s1 + $0x30] sm:$0x3f]  }
  0x10   : > { %2524 = vmatprep.subr.bf16.mxu0 %v2689_v1  ;;  %s3915_s18 = smov (!%p170_p3, %s2309_s18), 1023  ;;  %2665 = vmatprep.subr.bf16.mxu1 %v2689_v1  ;;  %v884_v8 = vsel %vm882_vm1, %v2694_v7, 0  ;;  %s3917_s13 = smov (!%p181_p4, %s2793_s13), 7 }
  0x11   : > { %s2310_s21 = sshll.u32 %s3915_s18, 2  ;;  %s2312_s6 = sshll.u32 %s3915_s18, 3 }
  0x12   : > { %s2816_s26 = scalar_lea.vmem %s3866_s0, %s2310_s21  ;;  %s2959_s9 = scalar_lea.vmem %s3868_s2, %s2312_s6 }
  0x13   : > { %2525 = vmatpush3.bf16.msra.mxu0 %v2689_v1  ;;  %2672 = vmatpush3.bf16.msra.mxu1 %v2689_v1  ;;  %v2695_v4 = vld [vmem:[%s2816_s26] sm:$0xff]   ;;  %v2696_v9 = vld [vmem:[%s2816_s26 + $0x8] sm:$0xff]   ;;  %v2697_v10 = vld [vmem:[%s2816_s26 + $0x10] sm:$0xff]   ;;  %s2313_s10 = sshll.u32 %s3917_s13, 3 }
  0x14   : > { %2526 = vmatprep.subr.bf16.mxu0 %v2690_v2  ;;  %2666 = vmatprep.subr.bf16.mxu1 %v2690_v2  ;;  %v2698_v11 = vld [vmem:[%s2816_s26 + $0x18] sm:$0xff]   ;;  %v2699_v12 = vld [vmem:[%s2816_s26 + $0x20] sm:$0xff]   ;;  %v2700_v13 = vld [vmem:[%s2816_s26 + $0x28] sm:$0xff]   ;;  %s184_s15 = scalar_lea.vmem %s3869_s3, %s2313_s10 }
  0x15   : > { %2536 = vmatprep.mubr.msk.bf16.mxu0 %vm689_vm0, %v2695_v4  ;;  %v2701_v14 = vld [vmem:[%s2816_s26 + $0x30] sm:$0xff]   ;;  %v2727_v15 = vld [vmem:[%s2816_s26 + $0x100] sm:$0xff]   ;;  %v2728_v16 = vld [vmem:[%s2816_s26 + $0x108] sm:$0xff]  }
  0x16   : > { %2600 = vmatprep.mubr.msk.bf16.mxu1 %vm689_vm0, %v2727_v15  ;;  %v2729_v17 = vld [vmem:[%s2816_s26 + $0x110] sm:$0xff]   ;;  %v2730_v18 = vld [vmem:[%s2816_s26 + $0x118] sm:$0xff]   ;;  %v2731_v19 = vld [vmem:[%s2816_s26 + $0x120] sm:$0xff]  }
  0x17   : > { %2527 = vmatpush3.bf16.msra.mxu0 %v2690_v2  ;;  %2673 = vmatpush3.bf16.msra.mxu1 %v2690_v2  ;;  %v2702_v20 = vld [vmem:[%s2816_s26 + $0x38] sm:$0xff]   ;;  %v2703_v21 = vld [vmem:[%s2816_s26 + $0x40] sm:$0xff]   ;;  %v2732_v22 = vld [vmem:[%s2816_s26 + $0x128] sm:$0xff]  }
  0x18   : > { %2528 = vmatprep.subr.bf16.mxu0 %v2691_v3  ;;  %2667 = vmatprep.subr.bf16.mxu1 %v2691_v3  ;;  %v2733_v23 = vld [vmem:[%s2816_s26 + $0x130] sm:$0xff]   ;;  %v2704_v24 = vld [vmem:[%s2816_s26 + $0x48] sm:$0xff]   ;;  %v2734_v26 = vld [vmem:[%s2816_s26 + $0x138] sm:$0xff]  }
  0x19   : > { %v2705_v25 = vld [vmem:[%s2816_s26 + $0x50] sm:$0xff]   ;;  %v2735_v27 = vld [vmem:[%s2816_s26 + $0x140] sm:$0xff]   ;;  %v2706_v28 = vld [vmem:[%s2816_s26 + $0x58] sm:$0xff]  }
  0x1a   : > { %v2707_v29 = vld [vmem:[%s2816_s26 + $0x60] sm:$0xff]   ;;  %v2736_v30 = vld [vmem:[%s2816_s26 + $0x148] sm:$0xff]   ;;  %v2737_v31 = vld [vmem:[%s2816_s26 + $0x150] sm:$0xff]  }
  0x1b   : > { %2529 = vmatpush3.bf16.msra.mxu0 %v2691_v3  ;;  %2674 = vmatpush3.bf16.msra.mxu1 %v2691_v3  ;;  %v2708_v32 = vld [vmem:[%s2816_s26 + $0x68] sm:$0xff]   ;;  %v2709_v33 = vld [vmem:[%s2816_s26 + $0x70] sm:$0xff]   ;;  %v2738_v34 = vld [vmem:[%s2816_s26 + $0x158] sm:$0xff]  }
  0x1c   : > { %2530 = vmatprep.subr.bf16.mxu0 %v2692_v5  ;;  %2668 = vmatprep.subr.bf16.mxu1 %v2692_v5  ;;  %v2739_v35 = vld [vmem:[%s2816_s26 + $0x160] sm:$0xff]   ;;  %v2710_v36 = vld [vmem:[%s2816_s26 + $0x78] sm:$0xff]   ;;  %v2740_v38 = vld [vmem:[%s2816_s26 + $0x168] sm:$0xff]  }
  0x1d   : > { %v2711_v37 = vld [vmem:[%s2816_s26 + $0x80] sm:$0xff]   ;;  %v2741_v39 = vld [vmem:[%s2816_s26 + $0x170] sm:$0xff]   ;;  %v2712_v40 = vld [vmem:[%s2816_s26 + $0x88] sm:$0xff]  }
  0x1e   : > { %v2713_v41 = vld [vmem:[%s2816_s26 + $0x90] sm:$0xff]   ;;  %v2742_v42 = vld [vmem:[%s2816_s26 + $0x178] sm:$0xff]   ;;  %v2743_v43 = vld [vmem:[%s2816_s26 + $0x180] sm:$0xff]  }
  0x1f   : > { %2531 = vmatpush3.bf16.msra.mxu0 %v2692_v5  ;;  %2675 = vmatpush3.bf16.msra.mxu1 %v2692_v5  ;;  %v2714_v44 = vld [vmem:[%s2816_s26 + $0x98] sm:$0xff]   ;;  %v2715_v45 = vld [vmem:[%s2816_s26 + $0xa0] sm:$0xff]   ;;  %v2744_v46 = vld [vmem:[%s2816_s26 + $0x188] sm:$0xff]  }
  0x20   : > { %2532 = vmatprep.subr.bf16.mxu0 %v2693_v6  ;;  %2669 = vmatprep.subr.bf16.mxu1 %v2693_v6  ;;  %v2745_v47 = vld [vmem:[%s2816_s26 + $0x190] sm:$0xff]   ;;  %v2716_v48 = vld [vmem:[%s2816_s26 + $0xa8] sm:$0xff]   ;;  %v2746_v50 = vld [vmem:[%s2816_s26 + $0x198] sm:$0xff]  }
  0x21   : > { %v2717_v49 = vld [vmem:[%s2816_s26 + $0xb0] sm:$0xff]   ;;  %v2747_v51 = vld [vmem:[%s2816_s26 + $0x1a0] sm:$0xff]   ;;  %v2718_v52 = vld [vmem:[%s2816_s26 + $0xb8] sm:$0xff]  }
  0x22   : > { %v2719_v53 = vld [vmem:[%s2816_s26 + $0xc0] sm:$0xff]   ;;  %v2748_v54 = vld [vmem:[%s2816_s26 + $0x1a8] sm:$0xff]   ;;  %v2749_v55 = vld [vmem:[%s2816_s26 + $0x1b0] sm:$0xff]  }
  0x23   : > { %2533 = vmatpush3.bf16.msra.mxu0 %v2693_v6  ;;  %2676 = vmatpush3.bf16.msra.mxu1 %v2693_v6  ;;  %v2720_v56 = vld [vmem:[%s2816_s26 + $0xc8] sm:$0xff]   ;;  %v2721_v57 = vld [vmem:[%s2816_s26 + $0xd0] sm:$0xff]   ;;  %v2750_v58 = vld [vmem:[%s2816_s26 + $0x1b8] sm:$0xff]  }
  0x24   : > { %2678 = vmatprep.subr.msk.bf16.mxu0 %vm882_vm1, %v2694_v7  ;;  %2679 = vmatprep.subr.msk.bf16.mxu1 %vm882_vm1, %v2694_v7  ;;  %v2751_v59 = vld [vmem:[%s2816_s26 + $0x1c0] sm:$0xff]   ;;  %v2722_v60 = vld [vmem:[%s2816_s26 + $0xd8] sm:$0xff]   ;;  %v2752_v62 = vld [vmem:[%s2816_s26 + $0x1c8] sm:$0xff]  }
  0x25   : > { %v2723_v61 = vld [vmem:[%s2816_s26 + $0xe0] sm:$0xff]   ;;  %v2753_v63 = vld [vmem:[%s2816_s26 + $0x1d0] sm:$0xff]   ;;  %v2724_v0 = vld [vmem:[%s2816_s26 + $0xe8] sm:$0xff]  }
  0x26   : > { %v2725_v1 = vld [vmem:[%s2816_s26 + $0xf0] sm:$0xff]   ;;  %v2754_v2 = vld [vmem:[%s2816_s26 + $0x1d8] sm:$0xff]   ;;  %v2755_v3 = vld [vmem:[%s2816_s26 + $0x1e0] sm:$0xff]  }
  0x27   : > { %2535 = vmatpush3.bf16.msra.mxu0 %v884_v8  ;;  %2677 = vmatpush3.bf16.msra.mxu1 %v884_v8  ;;  %v2726_v4 = vld [vmem:[%s2816_s26 + $0xf8] sm:$0xff]   ;;  %v2756_v5 = vld [vmem:[%s2816_s26 + $0x1e8] sm:$0xff]   ;;  %v2757_v6 = vld [vmem:[%s2816_s26 + $0x1f0] sm:$0xff]  }
  0x28   : > { %v2758_v7 = vld [vmem:[%s2816_s26 + $0x1f8] sm:$0xff]  }
  0x2a   : > { %2537 = vmatmul.mubr.msk.bf16.vlgmr.msra.gmra.mrb[0].mxu0 %vm689_vm0, %v2696_v9  ;;  %2601 = vmatmul.mubr.msk.bf16.vlgmr.msra.gmra.mrb[0].mxu1 %vm689_vm0, %v2728_v16 }
  0x2b   : > { %2540 = vmatprep.mubr.msk.bf16.mxu0 %vm689_vm0, %v2697_v10  ;;  %2604 = vmatprep.mubr.msk.bf16.mxu1 %vm689_vm0, %v2729_v17 }
  0x32   : > { %2541 = vmatmul.mubr.msk.bf16.gmra.mrb[4].mxu0 %vm689_vm0, %v2698_v11  ;;  %2605 = vmatmul.mubr.msk.bf16.gmra.mrb[4].mxu1 %vm689_vm0, %v2730_v18 }
  0x33   : > { %2544 = vmatprep.mubr.msk.bf16.mxu0 %vm689_vm0, %v2699_v12  ;;  %2608 = vmatprep.mubr.msk.bf16.mxu1 %vm689_vm0, %v2731_v19 }
  0x3a   : > { %2545 = vmatmul.mubr.msk.bf16.gmra.mrb[8].mxu0 %vm689_vm0, %v2700_v13  ;;  %2609 = vmatmul.mubr.msk.bf16.gmra.mrb[8].mxu1 %vm689_vm0, %v2732_v22 }
  0x3b   : > { %2548 = vmatprep.mubr.msk.bf16.mxu0 %vm689_vm0, %v2701_v14  ;;  %2612 = vmatprep.mubr.msk.bf16.mxu1 %vm689_vm0, %v2733_v23 }
  0x42   : > { %2549 = vmatmul.mubr.msk.bf16.gmra.mrb[12].mxu0 %vm689_vm0, %v2702_v20  ;;  %2613 = vmatmul.mubr.msk.bf16.gmra.mrb[12].mxu1 %vm689_vm0, %v2734_v26 }
  0x43   : > { %2552 = vmatprep.mubr.msk.bf16.mxu0 %vm689_vm0, %v2703_v21  ;;  %2616 = vmatprep.mubr.msk.bf16.mxu1 %vm689_vm0, %v2735_v27 }
  0x4a   : > { %2553 = vmatmul.mubr.msk.bf16.gmra.mrb[16].mxu0 %vm689_vm0, %v2704_v24  ;;  %2617 = vmatmul.mubr.msk.bf16.gmra.mrb[16].mxu1 %vm689_vm0, %v2736_v30 }
  0x4b   : > { %2556 = vmatprep.mubr.msk.bf16.mxu0 %vm689_vm0, %v2705_v25  ;;  %2620 = vmatprep.mubr.msk.bf16.mxu1 %vm689_vm0, %v2737_v31 }
  0x52   : > { %2557 = vmatmul.mubr.msk.bf16.gmra.mrb[20].mxu0 %vm689_vm0, %v2706_v28  ;;  %2621 = vmatmul.mubr.msk.bf16.gmra.mrb[20].mxu1 %vm689_vm0, %v2738_v34 }
  0x53   : > { %2560 = vmatprep.mubr.msk.bf16.mxu0 %vm689_vm0, %v2707_v29  ;;  %2624 = vmatprep.mubr.msk.bf16.mxu1 %vm689_vm0, %v2739_v35 }
  0x5a   : > { %2561 = vmatmul.mubr.msk.bf16.gmra.mrb[24].mxu0 %vm689_vm0, %v2708_v32  ;;  %2625 = vmatmul.mubr.msk.bf16.gmra.mrb[24].mxu1 %vm689_vm0, %v2740_v38 }
  0x5b   : > { %2564 = vmatprep.mubr.msk.bf16.mxu0 %vm689_vm0, %v2709_v33  ;;  %2628 = vmatprep.mubr.msk.bf16.mxu1 %vm689_vm0, %v2741_v39 }
  0x62   : > { %2565 = vmatmul.mubr.msk.bf16.gmra.mrb[28].mxu0 %vm689_vm0, %v2710_v36  ;;  %2629 = vmatmul.mubr.msk.bf16.gmra.mrb[28].mxu1 %vm689_vm0, %v2742_v42 }
  0x63   : > { %2568 = vmatprep.mubr.msk.bf16.mxu0 %vm689_vm0, %v2711_v37  ;;  %2632 = vmatprep.mubr.msk.bf16.mxu1 %vm689_vm0, %v2743_v43 }
  0x6a   : > { %2569 = vmatmul.mubr.msk.bf16.gmra.mrb[32].mxu0 %vm689_vm0, %v2712_v40  ;;  %2633 = vmatmul.mubr.msk.bf16.gmra.mrb[32].mxu1 %vm689_vm0, %v2744_v46 }
  0x6b   : > { %2572 = vmatprep.mubr.msk.bf16.mxu0 %vm689_vm0, %v2713_v41  ;;  %2636 = vmatprep.mubr.msk.bf16.mxu1 %vm689_vm0, %v2745_v47 }
  0x72   : > { %2573 = vmatmul.mubr.msk.bf16.gmra.mrb[36].mxu0 %vm689_vm0, %v2714_v44  ;;  %2637 = vmatmul.mubr.msk.bf16.gmra.mrb[36].mxu1 %vm689_vm0, %v2746_v50 }
  0x73   : > { %2576 = vmatprep.mubr.msk.bf16.mxu0 %vm689_vm0, %v2715_v45  ;;  %2640 = vmatprep.mubr.msk.bf16.mxu1 %vm689_vm0, %v2747_v51 }
  0x7a   : > { %2577 = vmatmul.mubr.msk.bf16.gmra.mrb[40].mxu0 %vm689_vm0, %v2716_v48  ;;  %2641 = vmatmul.mubr.msk.bf16.gmra.mrb[40].mxu1 %vm689_vm0, %v2748_v54 }
  0x7b   : > { %2580 = vmatprep.mubr.msk.bf16.mxu0 %vm689_vm0, %v2717_v49  ;;  %2644 = vmatprep.mubr.msk.bf16.mxu1 %vm689_vm0, %v2749_v55 }
  0x82   : > { %2581 = vmatmul.mubr.msk.bf16.gmra.mrb[44].mxu0 %vm689_vm0, %v2718_v52  ;;  %2645 = vmatmul.mubr.msk.bf16.gmra.mrb[44].mxu1 %vm689_vm0, %v2750_v58 }
  0x83   : > { %2584 = vmatprep.mubr.msk.bf16.mxu0 %vm689_vm0, %v2719_v53  ;;  %2648 = vmatprep.mubr.msk.bf16.mxu1 %vm689_vm0, %v2751_v59 }
  0x8a   : > { %2585 = vmatmul.mubr.msk.bf16.gmra.mrb[48].mxu0 %vm689_vm0, %v2720_v56  ;;  %2649 = vmatmul.mubr.msk.bf16.gmra.mrb[48].mxu1 %vm689_vm0, %v2752_v62 }
  0x8b   : > { %2588 = vmatprep.mubr.msk.bf16.mxu0 %vm689_vm0, %v2721_v57  ;;  %2652 = vmatprep.mubr.msk.bf16.mxu1 %vm689_vm0, %v2753_v63 }
  0x92   : > { %2589 = vmatmul.mubr.msk.bf16.gmra.mrb[52].mxu0 %vm689_vm0, %v2722_v60  ;;  %2653 = vmatmul.mubr.msk.bf16.gmra.mrb[52].mxu1 %vm689_vm0, %v2754_v2 }
  0x93   : > { %2592 = vmatprep.mubr.msk.bf16.mxu0 %vm689_vm0, %v2723_v61  ;;  %2656 = vmatprep.mubr.msk.bf16.mxu1 %vm689_vm0, %v2755_v3 }
  0x9a   : > { %2593 = vmatmul.mubr.msk.bf16.gmra.mrb[56].mxu0 %vm689_vm0, %v2724_v0  ;;  %2657 = vmatmul.mubr.msk.bf16.gmra.mrb[56].mxu1 %vm689_vm0, %v2756_v5 }
  0x9b   : > { %2596 = vmatprep.mubr.msk.bf16.mxu0 %vm689_vm0, %v2725_v1  ;;  %2660 = vmatprep.mubr.msk.bf16.mxu1 %vm689_vm0, %v2757_v6 }
  0xa2   : > { %2597 = vmatmul.mubr.msk.bf16.gmra.mrb[60].mxu0 %vm689_vm0, %v2726_v4  ;;  %2661 = vmatmul.mubr.msk.bf16.gmra.mrb[60].mxu1 %vm689_vm0, %v2758_v7 }
  0xfd   : > { %v2538_v8 = vpop.f32.mrb[0].mxu0  ;;  %v2990_v46 = vpop.f32.mrb[0].mxu1 }
  0xfe   : > { %1434 = vst.msk [vmem:[%s2959_s9 + $0x10] sm:$0xff] %vm1431_vm2, %v2538_v8  ;;  %v920_v9 = vpop.f32.mrb[1].mxu0  ;;  %v1823_v13 = vmul.f32 %v2538_v8, %v2538_v8  ;;  %v1563_v18 = vsel %vm1431_vm2, %v2538_v8, 0.0  ;;  %1498 = vst.msk [vmem:[%s2959_s9 + $0x210] sm:$0xff] %vm1431_vm2, %v2990_v46  ;;  %v2995_v49 = vpop.f32.mrb[1].mxu1 }
  0xff   : > { %1432 = vst.msk [vmem:[%s2959_s9] sm:$0xff] %vm1431_vm2, %v920_v9  ;;  %v1821_v10 = vmul.f32 %v920_v9, %v920_v9  ;;  %v2539_v11 = vpop.f32.mrb[2].mxu0  ;;  %v1560_v14 = vsel %vm1431_vm2, %v920_v9, 0.0  ;;  %1496 = vst.msk [vmem:[%s2959_s9 + $0x200] sm:$0xff] %vm1431_vm2, %v2995_v49  ;;  %v3002_v53 = vpop.f32.mrb[2].mxu1 }
 0x100   : > { %1435 = vst.msk [vmem:[%s2959_s9 + $0x18] sm:$0xff] %vm1431_vm2, %v2539_v11  ;;  %v923_v12 = vpop.f32.mrb[3].mxu0  ;;  %v1824_v20 = vmul.f32 %v2539_v11, %v2539_v11  ;;  %v1952_v24 = vsel %vm1431_vm2, %v1823_v13, 0.0  ;;  %v1565_v25 = vsel %vm1431_vm2, %v2539_v11, 0.0  ;;  %1499 = vst.msk [vmem:[%s2959_s9 + $0x218] sm:$0xff] %vm1431_vm2, %v3002_v53  ;;  %v3009_v57 = vpop.f32.mrb[3].mxu1 }
 0x101   : > { %1433 = vst.msk [vmem:[%s2959_s9 + $0x8] sm:$0xff] %vm1431_vm2, %v923_v12  ;;  %v1561_v15 = vsel %vm1431_vm2, %v923_v12, 0.0  ;;  %v1822_v16 = vmul.f32 %v923_v12, %v923_v12  ;;  %v1949_v19 = vsel %vm1431_vm2, %v1821_v10, 0.0  ;;  %1497 = vst.msk [vmem:[%s2959_s9 + $0x208] sm:$0xff] %vm1431_vm2, %v3009_v57 }
 0x102   : > { %v1562_v17 = vadd.f32 %v1561_v15, %v1560_v14  ;;  %v1954_v30 = vsel %vm1431_vm2, %v1824_v20, 0.0 }
 0x103   : > { %v1950_v21 = vsel %vm1431_vm2, %v1822_v16, 0.0 }
 0x104   : > { %v1564_v22 = vadd.f32 %v1563_v18, %v1562_v17  ;;  %v1951_v23 = vadd.f32 %v1950_v21, %v1949_v19 }
 0x105   : > { %v2542_v26 = vpop.f32.mrb[4].mxu0  ;;  %v3026_v10 = vpop.f32.mrb[4].mxu1 }
 0x106   : > { %v1953_v27 = vadd.f32 %v1952_v24, %v1951_v23  ;;  %1438 = vst.msk [vmem:[%s2959_s9 + $0x30] sm:$0xff] %vm1431_vm2, %v2542_v26  ;;  %v936_v28 = vpop.f32.mrb[5].mxu0  ;;  %v1566_v29 = vadd.f32 %v1565_v25, %v1564_v22  ;;  %v1827_v37 = vmul.f32 %v2542_v26, %v2542_v26  ;;  %v1571_v43 = vsel %vm1431_vm2, %v2542_v26, 0.0  ;;  %1502 = vst.msk [vmem:[%s2959_s9 + $0x230] sm:$0xff] %vm1431_vm2, %v3026_v10  ;;  %v3031_v13 = vpop.f32.mrb[5].mxu1 }
 0x107   : > { %1436 = vst.msk [vmem:[%s2959_s9 + $0x20] sm:$0xff] %vm1431_vm2, %v936_v28  ;;  %v1567_v31 = vsel %vm1431_vm2, %v936_v28, 0.0  ;;  %v1825_v32 = vmul.f32 %v936_v28, %v936_v28  ;;  %v2543_v33 = vpop.f32.mrb[6].mxu0  ;;  %1500 = vst.msk [vmem:[%s2959_s9 + $0x220] sm:$0xff] %vm1431_vm2, %v3031_v13  ;;  %v3038_v17 = vpop.f32.mrb[6].mxu1 }
 0x108   : > { %v1568_v34 = vadd.f32 %v1567_v31, %v1566_v29  ;;  %v1955_v35 = vadd.f32 %v1954_v30, %v1953_v27  ;;  %1439 = vst.msk [vmem:[%s2959_s9 + $0x38] sm:$0xff] %vm1431_vm2, %v2543_v33  ;;  %v939_v36 = vpop.f32.mrb[7].mxu0  ;;  %v1828_v44 = vmul.f32 %v2543_v33, %v2543_v33  ;;  %v1960_v50 = vsel %vm1431_vm2, %v1827_v37, 0.0  ;;  %1503 = vst.msk [vmem:[%s2959_s9 + $0x238] sm:$0xff] %vm1431_vm2, %v3038_v17  ;;  %v3045_v21 = vpop.f32.mrb[7].mxu1 }
 0x109   : > { %v1956_v38 = vsel %vm1431_vm2, %v1825_v32, 0.0  ;;  %1437 = vst.msk [vmem:[%s2959_s9 + $0x28] sm:$0xff] %vm1431_vm2, %v939_v36  ;;  %v1569_v39 = vsel %vm1431_vm2, %v939_v36, 0.0  ;;  %v1826_v40 = vmul.f32 %v939_v36, %v939_v36  ;;  %v1573_v51 = vsel %vm1431_vm2, %v2543_v33, 0.0  ;;  %1501 = vst.msk [vmem:[%s2959_s9 + $0x228] sm:$0xff] %vm1431_vm2, %v3045_v21 }
 0x10a   : > { %v1957_v41 = vadd.f32 %v1956_v38, %v1955_v35  ;;  %v1570_v42 = vadd.f32 %v1569_v39, %v1568_v34  ;;  %v1962_v58 = vsel %vm1431_vm2, %v1828_v44, 0.0 }
 0x10b   : > { %v1958_v45 = vsel %vm1431_vm2, %v1826_v40, 0.0 }
 0x10c   : > { %v1572_v47 = vadd.f32 %v1571_v43, %v1570_v42  ;;  %v1959_v48 = vadd.f32 %v1958_v45, %v1957_v41 }
 0x10d   : > { %v2546_v52 = vpop.f32.mrb[8].mxu0  ;;  %v3062_v38 = vpop.f32.mrb[8].mxu1 }
 0x10e   : > { %v1961_v54 = vadd.f32 %v1960_v50, %v1959_v48  ;;  %1442 = vst.msk [vmem:[%s2959_s9 + $0x50] sm:$0xff] %vm1431_vm2, %v2546_v52  ;;  %v952_v55 = vpop.f32.mrb[9].mxu0  ;;  %v1574_v56 = vadd.f32 %v1573_v51, %v1572_v47  ;;  %v1831_v1 = vmul.f32 %v2546_v52, %v2546_v52  ;;  %v1579_v7 = vsel %vm1431_vm2, %v2546_v52, 0.0  ;;  %1506 = vst.msk [vmem:[%s2959_s9 + $0x250] sm:$0xff] %vm1431_vm2, %v3062_v38  ;;  %v3067_v41 = vpop.f32.mrb[9].mxu1 }
 0x10f   : > { %1440 = vst.msk [vmem:[%s2959_s9 + $0x40] sm:$0xff] %vm1431_vm2, %v952_v55  ;;  %v1575_v59 = vsel %vm1431_vm2, %v952_v55, 0.0  ;;  %v1829_v60 = vmul.f32 %v952_v55, %v952_v55  ;;  %v2547_v61 = vpop.f32.mrb[10].mxu0  ;;  %1504 = vst.msk [vmem:[%s2959_s9 + $0x240] sm:$0xff] %vm1431_vm2, %v3067_v41  ;;  %v3074_v45 = vpop.f32.mrb[10].mxu1 }
 0x110   : > { %v1576_v62 = vadd.f32 %v1575_v59, %v1574_v56  ;;  %v1963_v63 = vadd.f32 %v1962_v58, %v1961_v54  ;;  %1443 = vst.msk [vmem:[%s2959_s9 + $0x58] sm:$0xff] %vm1431_vm2, %v2547_v61  ;;  %v955_v0 = vpop.f32.mrb[11].mxu0  ;;  %v1832_v8 = vmul.f32 %v2547_v61, %v2547_v61  ;;  %v1968_v14 = vsel %vm1431_vm2, %v1831_v1, 0.0  ;;  %1507 = vst.msk [vmem:[%s2959_s9 + $0x258] sm:$0xff] %vm1431_vm2, %v3074_v45  ;;  %v3081_v51 = vpop.f32.mrb[11].mxu1 }
 0x111   : > { %v1964_v2 = vsel %vm1431_vm2, %v1829_v60, 0.0  ;;  %1441 = vst.msk [vmem:[%s2959_s9 + $0x48] sm:$0xff] %vm1431_vm2, %v955_v0  ;;  %v1577_v3 = vsel %vm1431_vm2, %v955_v0, 0.0  ;;  %v1830_v4 = vmul.f32 %v955_v0, %v955_v0  ;;  %v1581_v15 = vsel %vm1431_vm2, %v2547_v61, 0.0  ;;  %1505 = vst.msk [vmem:[%s2959_s9 + $0x248] sm:$0xff] %vm1431_vm2, %v3081_v51 }
 0x112   : > { %v1965_v5 = vadd.f32 %v1964_v2, %v1963_v63  ;;  %v1578_v6 = vadd.f32 %v1577_v3, %v1576_v62  ;;  %v1970_v22 = vsel %vm1431_vm2, %v1832_v8, 0.0 }
 0x113   : > { %v1966_v9 = vsel %vm1431_vm2, %v1830_v4, 0.0 }
 0x114   : > { %v1580_v11 = vadd.f32 %v1579_v7, %v1578_v6  ;;  %v1967_v12 = vadd.f32 %v1966_v9, %v1965_v5 }
 0x115   : > { %v2550_v16 = vpop.f32.mrb[12].mxu0  ;;  %v3098_v6 = vpop.f32.mrb[12].mxu1 }
 0x116   : > { %v1969_v18 = vadd.f32 %v1968_v14, %v1967_v12  ;;  %1446 = vst.msk [vmem:[%s2959_s9 + $0x70] sm:$0xff] %vm1431_vm2, %v2550_v16  ;;  %v968_v19 = vpop.f32.mrb[13].mxu0  ;;  %v1582_v20 = vadd.f32 %v1581_v15, %v1580_v11  ;;  %v1835_v29 = vmul.f32 %v2550_v16, %v2550_v16  ;;  %v1587_v35 = vsel %vm1431_vm2, %v2550_v16, 0.0  ;;  %1510 = vst.msk [vmem:[%s2959_s9 + $0x270] sm:$0xff] %vm1431_vm2, %v3098_v6  ;;  %v3103_v9 = vpop.f32.mrb[13].mxu1 }
 0x117   : > { %1444 = vst.msk [vmem:[%s2959_s9 + $0x60] sm:$0xff] %vm1431_vm2, %v968_v19  ;;  %v1583_v23 = vsel %vm1431_vm2, %v968_v19, 0.0  ;;  %v1833_v24 = vmul.f32 %v968_v19, %v968_v19  ;;  %v2551_v25 = vpop.f32.mrb[14].mxu0  ;;  %1508 = vst.msk [vmem:[%s2959_s9 + $0x260] sm:$0xff] %vm1431_vm2, %v3103_v9  ;;  %v3110_v15 = vpop.f32.mrb[14].mxu1 }
 0x118   : > { %v1584_v26 = vadd.f32 %v1583_v23, %v1582_v20  ;;  %v1971_v27 = vadd.f32 %v1970_v22, %v1969_v18  ;;  %1447 = vst.msk [vmem:[%s2959_s9 + $0x78] sm:$0xff] %vm1431_vm2, %v2551_v25  ;;  %v971_v28 = vpop.f32.mrb[15].mxu0  ;;  %v1836_v36 = vmul.f32 %v2551_v25, %v2551_v25  ;;  %v1976_v42 = vsel %vm1431_vm2, %v1835_v29, 0.0  ;;  %1511 = vst.msk [vmem:[%s2959_s9 + $0x278] sm:$0xff] %vm1431_vm2, %v3110_v15  ;;  %v3117_v20 = vpop.f32.mrb[15].mxu1 }
 0x119   : > { %v1972_v30 = vsel %vm1431_vm2, %v1833_v24, 0.0  ;;  %1445 = vst.msk [vmem:[%s2959_s9 + $0x68] sm:$0xff] %vm1431_vm2, %v971_v28  ;;  %v1585_v31 = vsel %vm1431_vm2, %v971_v28, 0.0  ;;  %v1834_v32 = vmul.f32 %v971_v28, %v971_v28  ;;  %v1589_v43 = vsel %vm1431_vm2, %v2551_v25, 0.0  ;;  %1509 = vst.msk [vmem:[%s2959_s9 + $0x268] sm:$0xff] %vm1431_vm2, %v3117_v20 }
 0x11a   : > { %v1973_v33 = vadd.f32 %v1972_v30, %v1971_v27  ;;  %v1586_v34 = vadd.f32 %v1585_v31, %v1584_v26  ;;  %v1978_v52 = vsel %vm1431_vm2, %v1836_v36, 0.0 }
 0x11b   : > { %v1974_v37 = vsel %vm1431_vm2, %v1834_v32, 0.0 }
 0x11c   : > { %v1588_v39 = vadd.f32 %v1587_v35, %v1586_v34  ;;  %v1975_v40 = vadd.f32 %v1974_v37, %v1973_v33 }
 0x11d   : > { %v2554_v44 = vpop.f32.mrb[16].mxu0 }
 0x11e   : > { %v1977_v47 = vadd.f32 %v1976_v42, %v1975_v40  ;;  %1450 = vst.msk [vmem:[%s2959_s9 + $0x90] sm:$0xff] %vm1431_vm2, %v2554_v44  ;;  %v984_v48 = vpop.f32.mrb[17].mxu0  ;;  %v1590_v50 = vadd.f32 %v1589_v43, %v1588_v39  ;;  %v1839_v61 = vmul.f32 %v2554_v44, %v2554_v44  ;;  %v1595_v3 = vsel %vm1431_vm2, %v2554_v44, 0.0  ;;  %v3134_v39 = vpop.f32.mrb[16].mxu1 }
 0x11f   : > { %1448 = vst.msk [vmem:[%s2959_s9 + $0x80] sm:$0xff] %vm1431_vm2, %v984_v48  ;;  %v1591_v54 = vsel %vm1431_vm2, %v984_v48, 0.0  ;;  %v1837_v55 = vmul.f32 %v984_v48, %v984_v48  ;;  %v2555_v56 = vpop.f32.mrb[18].mxu0  ;;  %1514 = vst.msk [vmem:[%s2959_s9 + $0x290] sm:$0xff] %vm1431_vm2, %v3134_v39  ;;  %v3139_v43 = vpop.f32.mrb[17].mxu1 }
 0x120   : > { %v1592_v58 = vadd.f32 %v1591_v54, %v1590_v50  ;;  %v1979_v59 = vadd.f32 %v1978_v52, %v1977_v47  ;;  %1451 = vst.msk [vmem:[%s2959_s9 + $0x98] sm:$0xff] %vm1431_vm2, %v2555_v56  ;;  %v987_v60 = vpop.f32.mrb[19].mxu0  ;;  %v1840_v4 = vmul.f32 %v2555_v56, %v2555_v56  ;;  %v1984_v11 = vsel %vm1431_vm2, %v1839_v61, 0.0  ;;  %1512 = vst.msk [vmem:[%s2959_s9 + $0x280] sm:$0xff] %vm1431_vm2, %v3139_v43  ;;  %v3146_v50 = vpop.f32.mrb[18].mxu1 }
 0x121   : > { %v1980_v62 = vsel %vm1431_vm2, %v1837_v55, 0.0  ;;  %1449 = vst.msk [vmem:[%s2959_s9 + $0x88] sm:$0xff] %vm1431_vm2, %v987_v60  ;;  %v1593_v63 = vsel %vm1431_vm2, %v987_v60, 0.0  ;;  %v1838_v0 = vmul.f32 %v987_v60, %v987_v60  ;;  %v1597_v12 = vsel %vm1431_vm2, %v2555_v56, 0.0  ;;  %1515 = vst.msk [vmem:[%s2959_s9 + $0x298] sm:$0xff] %vm1431_vm2, %v3146_v50  ;;  %v3153_v56 = vpop.f32.mrb[19].mxu1 }
 0x122   : > { %v1981_v1 = vadd.f32 %v1980_v62, %v1979_v59  ;;  %v1594_v2 = vadd.f32 %v1593_v63, %v1592_v58  ;;  %v1986_v22 = vsel %vm1431_vm2, %v1840_v4, 0.0  ;;  %1513 = vst.msk [vmem:[%s2959_s9 + $0x288] sm:$0xff] %vm1431_vm2, %v3153_v56 }
 0x123   : > { %v1982_v5 = vsel %vm1431_vm2, %v1838_v0, 0.0 }
 0x124   : > { %v1596_v7 = vadd.f32 %v1595_v3, %v1594_v2  ;;  %v1983_v8 = vadd.f32 %v1982_v5, %v1981_v1 }
 0x125   : > { %v2558_v14 = vpop.f32.mrb[20].mxu0 }
 0x126   : > { %v1985_v16 = vadd.f32 %v1984_v11, %v1983_v8  ;;  %1454 = vst.msk [vmem:[%s2959_s9 + $0xb0] sm:$0xff] %vm1431_vm2, %v2558_v14  ;;  %v1000_v18 = vpop.f32.mrb[21].mxu0  ;;  %v1598_v19 = vadd.f32 %v1597_v12, %v1596_v7  ;;  %v1843_v29 = vmul.f32 %v2558_v14, %v2558_v14  ;;  %v1603_v35 = vsel %vm1431_vm2, %v2558_v14, 0.0  ;;  %v3170_v14 = vpop.f32.mrb[20].mxu1 }
 0x127   : > { %1452 = vst.msk [vmem:[%s2959_s9 + $0xa0] sm:$0xff] %vm1431_vm2, %v1000_v18  ;;  %v1599_v23 = vsel %vm1431_vm2, %v1000_v18, 0.0  ;;  %v1841_v24 = vmul.f32 %v1000_v18, %v1000_v18  ;;  %v2559_v25 = vpop.f32.mrb[22].mxu0  ;;  %1518 = vst.msk [vmem:[%s2959_s9 + $0x2b0] sm:$0xff] %vm1431_vm2, %v3170_v14 }
 0x128   : > { %v1600_v26 = vadd.f32 %v1599_v23, %v1598_v19  ;;  %v1987_v27 = vadd.f32 %v1986_v22, %v1985_v16  ;;  %1455 = vst.msk [vmem:[%s2959_s9 + $0xb8] sm:$0xff] %vm1431_vm2, %v2559_v25  ;;  %v1003_v28 = vpop.f32.mrb[23].mxu0  ;;  %v1844_v36 = vmul.f32 %v2559_v25, %v2559_v25  ;;  %v1992_v44 = vsel %vm1431_vm2, %v1843_v29, 0.0  ;;  %v3175_v19 = vpop.f32.mrb[21].mxu1 }
 0x129   : > { %v1988_v30 = vsel %vm1431_vm2, %v1841_v24, 0.0  ;;  %1453 = vst.msk [vmem:[%s2959_s9 + $0xa8] sm:$0xff] %vm1431_vm2, %v1003_v28  ;;  %v1601_v31 = vsel %vm1431_vm2, %v1003_v28, 0.0  ;;  %v1842_v32 = vmul.f32 %v1003_v28, %v1003_v28  ;;  %v1605_v47 = vsel %vm1431_vm2, %v2559_v25, 0.0  ;;  %1516 = vst.msk [vmem:[%s2959_s9 + $0x2a0] sm:$0xff] %vm1431_vm2, %v3175_v19  ;;  %v3182_v25 = vpop.f32.mrb[22].mxu1 }
 0x12a   : > { %v1989_v33 = vadd.f32 %v1988_v30, %v1987_v27  ;;  %v1602_v34 = vadd.f32 %v1601_v31, %v1600_v26  ;;  %v1994_v58 = vsel %vm1431_vm2, %v1844_v36, 0.0  ;;  %1519 = vst.msk [vmem:[%s2959_s9 + $0x2b8] sm:$0xff] %vm1431_vm2, %v3182_v25  ;;  %v3189_v29 = vpop.f32.mrb[23].mxu1 }
 0x12b   : > { %v1990_v37 = vsel %vm1431_vm2, %v1842_v32, 0.0  ;;  %1517 = vst.msk [vmem:[%s2959_s9 + $0x2a8] sm:$0xff] %vm1431_vm2, %v3189_v29 }
 0x12c   : > { %v1604_v40 = vadd.f32 %v1603_v35, %v1602_v34  ;;  %v1991_v42 = vadd.f32 %v1990_v37, %v1989_v33 }
 0x12d   : > { %v2562_v48 = vpop.f32.mrb[24].mxu0 }
 0x12e   : > { %v1993_v52 = vadd.f32 %v1992_v44, %v1991_v42  ;;  %1458 = vst.msk [vmem:[%s2959_s9 + $0xd0] sm:$0xff] %vm1431_vm2, %v2562_v48  ;;  %v1016_v54 = vpop.f32.mrb[25].mxu0  ;;  %v1606_v55 = vadd.f32 %v1605_v47, %v1604_v40  ;;  %v1847_v1 = vmul.f32 %v2562_v48, %v2562_v48  ;;  %v1611_v8 = vsel %vm1431_vm2, %v2562_v48, 0.0 }
 0x12f   : > { %1456 = vst.msk [vmem:[%s2959_s9 + $0xc0] sm:$0xff] %vm1431_vm2, %v1016_v54  ;;  %v1607_v59 = vsel %vm1431_vm2, %v1016_v54, 0.0  ;;  %v1845_v60 = vmul.f32 %v1016_v54, %v1016_v54  ;;  %v2563_v61 = vpop.f32.mrb[26].mxu0 }
 0x130   : > { %v1608_v62 = vadd.f32 %v1607_v59, %v1606_v55  ;;  %v1995_v63 = vadd.f32 %v1994_v58, %v1993_v52  ;;  %1459 = vst.msk [vmem:[%s2959_s9 + $0xd8] sm:$0xff] %vm1431_vm2, %v2563_v61  ;;  %v1019_v0 = vpop.f32.mrb[27].mxu0  ;;  %v1848_v11 = vmul.f32 %v2563_v61, %v2563_v61  ;;  %v2000_v22 = vsel %vm1431_vm2, %v1847_v1, 0.0  ;;  %v3206_v58 = vpop.f32.mrb[24].mxu1 }
 0x131   : > { %v1996_v2 = vsel %vm1431_vm2, %v1845_v60, 0.0  ;;  %1457 = vst.msk [vmem:[%s2959_s9 + $0xc8] sm:$0xff] %vm1431_vm2, %v1019_v0  ;;  %v1609_v3 = vsel %vm1431_vm2, %v1019_v0, 0.0  ;;  %v1846_v4 = vmul.f32 %v1019_v0, %v1019_v0  ;;  %v1613_v23 = vsel %vm1431_vm2, %v2563_v61, 0.0  ;;  %1522 = vst.msk [vmem:[%s2959_s9 + $0x2d0] sm:$0xff] %vm1431_vm2, %v3206_v58  ;;  %v3211_v61 = vpop.f32.mrb[25].mxu1 }
 0x132   : > { %v1997_v5 = vadd.f32 %v1996_v2, %v1995_v63  ;;  %v1610_v7 = vadd.f32 %v1609_v3, %v1608_v62  ;;  %v2002_v30 = vsel %vm1431_vm2, %v1848_v11, 0.0  ;;  %1520 = vst.msk [vmem:[%s2959_s9 + $0x2c0] sm:$0xff] %vm1431_vm2, %v3211_v61  ;;  %v3218_v1 = vpop.f32.mrb[26].mxu1 }
 0x133   : > { %v1998_v12 = vsel %vm1431_vm2, %v1846_v4, 0.0  ;;  %1523 = vst.msk [vmem:[%s2959_s9 + $0x2d8] sm:$0xff] %vm1431_vm2, %v3218_v1 }
 0x134   : > { %v1612_v16 = vadd.f32 %v1611_v8, %v1610_v7  ;;  %v1999_v18 = vadd.f32 %v1998_v12, %v1997_v5  ;;  %v3225_v5 = vpop.f32.mrb[27].mxu1 }
 0x135   : > { %v2566_v24 = vpop.f32.mrb[28].mxu0  ;;  %1521 = vst.msk [vmem:[%s2959_s9 + $0x2c8] sm:$0xff] %vm1431_vm2, %v3225_v5 }
 0x136   : > { %v2001_v26 = vadd.f32 %v2000_v22, %v1999_v18  ;;  %1462 = vst.msk [vmem:[%s2959_s9 + $0xf0] sm:$0xff] %vm1431_vm2, %v2566_v24  ;;  %v1032_v27 = vpop.f32.mrb[29].mxu0  ;;  %v1614_v28 = vadd.f32 %v1613_v23, %v1612_v16  ;;  %v1851_v37 = vmul.f32 %v2566_v24, %v2566_v24  ;;  %v1619_v52 = vsel %vm1431_vm2, %v2566_v24, 0.0 }
 0x137   : > { %1460 = vst.msk [vmem:[%s2959_s9 + $0xe0] sm:$0xff] %vm1431_vm2, %v1032_v27  ;;  %v1615_v31 = vsel %vm1431_vm2, %v1032_v27, 0.0  ;;  %v1849_v32 = vmul.f32 %v1032_v27, %v1032_v27  ;;  %v2567_v33 = vpop.f32.mrb[30].mxu0 }
 0x138   : > { %v1616_v34 = vadd.f32 %v1615_v31, %v1614_v28  ;;  %v2003_v35 = vadd.f32 %v2002_v30, %v2001_v26  ;;  %1463 = vst.msk [vmem:[%s2959_s9 + $0xf8] sm:$0xff] %vm1431_vm2, %v2567_v33  ;;  %v1035_v36 = vpop.f32.mrb[31].mxu0  ;;  %v1852_v54 = vmul.f32 %v2567_v33, %v2567_v33  ;;  %v2008_v62 = vsel %vm1431_vm2, %v1851_v37, 0.0 }
 0x139   : > { %v2004_v40 = vsel %vm1431_vm2, %v1849_v32, 0.0  ;;  %1461 = vst.msk [vmem:[%s2959_s9 + $0xe8] sm:$0xff] %vm1431_vm2, %v1035_v36  ;;  %v1617_v42 = vsel %vm1431_vm2, %v1035_v36, 0.0  ;;  %v1850_v44 = vmul.f32 %v1035_v36, %v1035_v36  ;;  %v1621_v63 = vsel %vm1431_vm2, %v2567_v33, 0.0 }
 0x13a   : > { %v2005_v47 = vadd.f32 %v2004_v40, %v2003_v35  ;;  %v1618_v48 = vadd.f32 %v1617_v42, %v1616_v34  ;;  %v2010_v7 = vsel %vm1431_vm2, %v1852_v54, 0.0  ;;  %v3242_v34 = vpop.f32.mrb[28].mxu1 }
 0x13b   : > { %v2006_v55 = vsel %vm1431_vm2, %v1850_v44, 0.0  ;;  %1526 = vst.msk [vmem:[%s2959_s9 + $0x2f0] sm:$0xff] %vm1431_vm2, %v3242_v34  ;;  %v3247_v37 = vpop.f32.mrb[29].mxu1 }
 0x13c   : > { %v1620_v59 = vadd.f32 %v1619_v52, %v1618_v48  ;;  %v2007_v60 = vadd.f32 %v2006_v55, %v2005_v47  ;;  %1524 = vst.msk [vmem:[%s2959_s9 + $0x2e0] sm:$0xff] %vm1431_vm2, %v3247_v37  ;;  %v3254_v47 = vpop.f32.mrb[30].mxu1 }
 0x13d   : > { %v2570_v0 = vpop.f32.mrb[32].mxu0  ;;  %1527 = vst.msk [vmem:[%s2959_s9 + $0x2f8] sm:$0xff] %vm1431_vm2, %v3254_v47  ;;  %v3261_v55 = vpop.f32.mrb[31].mxu1 }
 0x13e   : > { %v2009_v2 = vadd.f32 %v2008_v62, %v2007_v60  ;;  %1466 = vst.msk [vmem:[%s2959_s9 + $0x110] sm:$0xff] %vm1431_vm2, %v2570_v0  ;;  %v1048_v3 = vpop.f32.mrb[33].mxu0  ;;  %v1622_v4 = vadd.f32 %v1621_v63, %v1620_v59  ;;  %v1855_v23 = vmul.f32 %v2570_v0, %v2570_v0  ;;  %v1627_v31 = vsel %vm1431_vm2, %v2570_v0, 0.0  ;;  %1525 = vst.msk [vmem:[%s2959_s9 + $0x2e8] sm:$0xff] %vm1431_vm2, %v3261_v55 }
 0x13f   : > { %1464 = vst.msk [vmem:[%s2959_s9 + $0x100] sm:$0xff] %vm1431_vm2, %v1048_v3  ;;  %v1623_v8 = vsel %vm1431_vm2, %v1048_v3, 0.0  ;;  %v1853_v11 = vmul.f32 %v1048_v3, %v1048_v3  ;;  %v2571_v12 = vpop.f32.mrb[34].mxu0 }
 0x140   : > { %v1624_v16 = vadd.f32 %v1623_v8, %v1622_v4  ;;  %v2011_v18 = vadd.f32 %v2010_v7, %v2009_v2  ;;  %1467 = vst.msk [vmem:[%s2959_s9 + $0x118] sm:$0xff] %vm1431_vm2, %v2571_v12  ;;  %v1051_v22 = vpop.f32.mrb[35].mxu0  ;;  %v1856_v32 = vmul.f32 %v2571_v12, %v2571_v12  ;;  %v2016_v40 = vsel %vm1431_vm2, %v1855_v23, 0.0 }
 0x141   : > { %v2012_v24 = vsel %vm1431_vm2, %v1853_v11, 0.0  ;;  %1465 = vst.msk [vmem:[%s2959_s9 + $0x108] sm:$0xff] %vm1431_vm2, %v1051_v22  ;;  %v1625_v26 = vsel %vm1431_vm2, %v1051_v22, 0.0  ;;  %v1854_v27 = vmul.f32 %v1051_v22, %v1051_v22  ;;  %v1629_v42 = vsel %vm1431_vm2, %v2571_v12, 0.0 }
 0x142   : > { %v2013_v28 = vadd.f32 %v2012_v24, %v2011_v18  ;;  %v1626_v30 = vadd.f32 %v1625_v26, %v1624_v16  ;;  %v2018_v59 = vsel %vm1431_vm2, %v1856_v32, 0.0  ;;  %v3278_v24 = vpop.f32.mrb[32].mxu1 }
 0x143   : > { %v2014_v33 = vsel %vm1431_vm2, %v1854_v27, 0.0  ;;  %1530 = vst.msk [vmem:[%s2959_s9 + $0x310] sm:$0xff] %vm1431_vm2, %v3278_v24 }
 0x144   : > { %v1628_v35 = vadd.f32 %v1627_v31, %v1626_v30  ;;  %v2015_v36 = vadd.f32 %v2014_v33, %v2013_v28  ;;  %v3283_v28 = vpop.f32.mrb[33].mxu1 }
 0x145   : > { %v2574_v44 = vpop.f32.mrb[36].mxu0  ;;  %1528 = vst.msk [vmem:[%s2959_s9 + $0x300] sm:$0xff] %vm1431_vm2, %v3283_v28  ;;  %v3290_v33 = vpop.f32.mrb[34].mxu1 }
 0x146   : > { %v2017_v48 = vadd.f32 %v2016_v40, %v2015_v36  ;;  %1470 = vst.msk [vmem:[%s2959_s9 + $0x130] sm:$0xff] %vm1431_vm2, %v2574_v44  ;;  %v1064_v52 = vpop.f32.mrb[37].mxu0  ;;  %v1630_v54 = vadd.f32 %v1629_v42, %v1628_v35  ;;  %v1859_v4 = vmul.f32 %v2574_v44, %v2574_v44  ;;  %v1635_v18 = vsel %vm1431_vm2, %v2574_v44, 0.0  ;;  %1531 = vst.msk [vmem:[%s2959_s9 + $0x318] sm:$0xff] %vm1431_vm2, %v3290_v33  ;;  %v3297_v42 = vpop.f32.mrb[35].mxu1 }
 0x147   : > { %1468 = vst.msk [vmem:[%s2959_s9 + $0x120] sm:$0xff] %vm1431_vm2, %v1064_v52  ;;  %v1631_v60 = vsel %vm1431_vm2, %v1064_v52, 0.0  ;;  %v1857_v62 = vmul.f32 %v1064_v52, %v1064_v52  ;;  %v2575_v63 = vpop.f32.mrb[38].mxu0  ;;  %1529 = vst.msk [vmem:[%s2959_s9 + $0x308] sm:$0xff] %vm1431_vm2, %v3297_v42 }
 0x148   : > { %v1632_v0 = vadd.f32 %v1631_v60, %v1630_v54  ;;  %v2019_v2 = vadd.f32 %v2018_v59, %v2017_v48  ;;  %1471 = vst.msk [vmem:[%s2959_s9 + $0x138] sm:$0xff] %vm1431_vm2, %v2575_v63  ;;  %v1067_v3 = vpop.f32.mrb[39].mxu0  ;;  %v1860_v22 = vmul.f32 %v2575_v63, %v2575_v63  ;;  %v2024_v30 = vsel %vm1431_vm2, %v1859_v4, 0.0 }
 0x149   : > { %v2020_v7 = vsel %vm1431_vm2, %v1857_v62, 0.0  ;;  %1469 = vst.msk [vmem:[%s2959_s9 + $0x128] sm:$0xff] %vm1431_vm2, %v1067_v3  ;;  %v1633_v8 = vsel %vm1431_vm2, %v1067_v3, 0.0  ;;  %v1858_v11 = vmul.f32 %v1067_v3, %v1067_v3  ;;  %v1637_v31 = vsel %vm1431_vm2, %v2575_v63, 0.0 }
 0x14a   : > { %v2021_v12 = vadd.f32 %v2020_v7, %v2019_v2  ;;  %v1634_v16 = vadd.f32 %v1633_v8, %v1632_v0  ;;  %v2026_v44 = vsel %vm1431_vm2, %v1860_v22, 0.0 }
 0x14b   : > { %v2022_v23 = vsel %vm1431_vm2, %v1858_v11, 0.0 }
 0x14c   : > { %v1636_v26 = vadd.f32 %v1635_v18, %v1634_v16  ;;  %v2023_v27 = vadd.f32 %v2022_v23, %v2021_v12  ;;  %v3314_v16 = vpop.f32.mrb[36].mxu1 }
 0x14d   : > { %v2578_v32 = vpop.f32.mrb[40].mxu0  ;;  %1534 = vst.msk [vmem:[%s2959_s9 + $0x330] sm:$0xff] %vm1431_vm2, %v3314_v16  ;;  %v3319_v23 = vpop.f32.mrb[37].mxu1 }
 0x14e   : > { %v2025_v35 = vadd.f32 %v2024_v30, %v2023_v27  ;;  %1474 = vst.msk [vmem:[%s2959_s9 + $0x150] sm:$0xff] %vm1431_vm2, %v2578_v32  ;;  %v1080_v36 = vpop.f32.mrb[41].mxu0  ;;  %v1638_v40 = vadd.f32 %v1637_v31, %v1636_v26  ;;  %v1863_v63 = vmul.f32 %v2578_v32, %v2578_v32  ;;  %v1643_v8 = vsel %vm1431_vm2, %v2578_v32, 0.0  ;;  %1532 = vst.msk [vmem:[%s2959_s9 + $0x320] sm:$0xff] %vm1431_vm2, %v3319_v23  ;;  %v3326_v31 = vpop.f32.mrb[38].mxu1 }
 0x14f   : > { %1472 = vst.msk [vmem:[%s2959_s9 + $0x140] sm:$0xff] %vm1431_vm2, %v1080_v36  ;;  %v1639_v48 = vsel %vm1431_vm2, %v1080_v36, 0.0  ;;  %v1861_v52 = vmul.f32 %v1080_v36, %v1080_v36  ;;  %v2579_v54 = vpop.f32.mrb[42].mxu0  ;;  %1535 = vst.msk [vmem:[%s2959_s9 + $0x338] sm:$0xff] %vm1431_vm2, %v3326_v31 }
 0x150   : > { %v1640_v59 = vadd.f32 %v1639_v48, %v1638_v40  ;;  %v2027_v60 = vadd.f32 %v2026_v44, %v2025_v35  ;;  %1475 = vst.msk [vmem:[%s2959_s9 + $0x158] sm:$0xff] %vm1431_vm2, %v2579_v54  ;;  %v1083_v62 = vpop.f32.mrb[43].mxu0  ;;  %v1864_v11 = vmul.f32 %v2579_v54, %v2579_v54  ;;  %v2032_v26 = vsel %vm1431_vm2, %v1863_v63, 0.0  ;;  %v3333_v40 = vpop.f32.mrb[39].mxu1 }
 0x151   : > { %v2028_v0 = vsel %vm1431_vm2, %v1861_v52, 0.0  ;;  %1473 = vst.msk [vmem:[%s2959_s9 + $0x148] sm:$0xff] %vm1431_vm2, %v1083_v62  ;;  %v1641_v2 = vsel %vm1431_vm2, %v1083_v62, 0.0  ;;  %v1862_v3 = vmul.f32 %v1083_v62, %v1083_v62  ;;  %v1645_v27 = vsel %vm1431_vm2, %v2579_v54, 0.0  ;;  %1533 = vst.msk [vmem:[%s2959_s9 + $0x328] sm:$0xff] %vm1431_vm2, %v3333_v40 }
 0x152   : > { %v2029_v4 = vadd.f32 %v2028_v0, %v2027_v60  ;;  %v1642_v7 = vadd.f32 %v1641_v2, %v1640_v59  ;;  %v2034_v44 = vsel %vm1431_vm2, %v1864_v11, 0.0 }
 0x153   : > { %v2030_v12 = vsel %vm1431_vm2, %v1862_v3, 0.0 }
 0x154   : > { %v1644_v18 = vadd.f32 %v1643_v8, %v1642_v7  ;;  %v2031_v22 = vadd.f32 %v2030_v12, %v2029_v4 }
 0x155   : > { %v2582_v30 = vpop.f32.mrb[44].mxu0 }
 0x156   : > { %v2033_v32 = vadd.f32 %v2032_v26, %v2031_v22  ;;  %1478 = vst.msk [vmem:[%s2959_s9 + $0x170] sm:$0xff] %vm1431_vm2, %v2582_v30  ;;  %v1096_v35 = vpop.f32.mrb[45].mxu0  ;;  %v1646_v36 = vadd.f32 %v1645_v27, %v1644_v18  ;;  %v1867_v63 = vmul.f32 %v2582_v30, %v2582_v30  ;;  %v1651_v8 = vsel %vm1431_vm2, %v2582_v30, 0.0  ;;  %v3350_v18 = vpop.f32.mrb[40].mxu1 }
 0x157   : > { %1476 = vst.msk [vmem:[%s2959_s9 + $0x160] sm:$0xff] %vm1431_vm2, %v1096_v35  ;;  %v1647_v48 = vsel %vm1431_vm2, %v1096_v35, 0.0  ;;  %v1865_v52 = vmul.f32 %v1096_v35, %v1096_v35  ;;  %v2583_v54 = vpop.f32.mrb[46].mxu0  ;;  %1538 = vst.msk [vmem:[%s2959_s9 + $0x350] sm:$0xff] %vm1431_vm2, %v3350_v18  ;;  %v3355_v27 = vpop.f32.mrb[41].mxu1 }
 0x158   : > { %v1648_v59 = vadd.f32 %v1647_v48, %v1646_v36  ;;  %v2035_v60 = vadd.f32 %v2034_v44, %v2033_v32  ;;  %1479 = vst.msk [vmem:[%s2959_s9 + $0x178] sm:$0xff] %vm1431_vm2, %v2583_v54  ;;  %v1099_v62 = vpop.f32.mrb[47].mxu0  ;;  %v1868_v11 = vmul.f32 %v2583_v54, %v2583_v54  ;;  %v2040_v32 = vsel %vm1431_vm2, %v1867_v63, 0.0  ;;  %1536 = vst.msk [vmem:[%s2959_s9 + $0x340] sm:$0xff] %vm1431_vm2, %v3355_v27  ;;  %v3362_v36 = vpop.f32.mrb[42].mxu1 }
 0x159   : > { %v2036_v0 = vsel %vm1431_vm2, %v1865_v52, 0.0  ;;  %1477 = vst.msk [vmem:[%s2959_s9 + $0x168] sm:$0xff] %vm1431_vm2, %v1099_v62  ;;  %v1649_v2 = vsel %vm1431_vm2, %v1099_v62, 0.0  ;;  %v1866_v3 = vmul.f32 %v1099_v62, %v1099_v62  ;;  %v1653_v35 = vsel %vm1431_vm2, %v2583_v54, 0.0  ;;  %1539 = vst.msk [vmem:[%s2959_s9 + $0x358] sm:$0xff] %vm1431_vm2, %v3362_v36 }
 0x15a   : > { %v2037_v4 = vadd.f32 %v2036_v0, %v2035_v60  ;;  %v1650_v7 = vadd.f32 %v1649_v2, %v1648_v59  ;;  %v3369_v59 = vpop.f32.mrb[43].mxu1  ;;  %v2042_v54 = vsel %vm1431_vm2, %v1868_v11, 0.0 }
 0x15b   : > { %v2038_v12 = vsel %vm1431_vm2, %v1866_v3, 0.0  ;;  %1537 = vst.msk [vmem:[%s2959_s9 + $0x348] sm:$0xff] %vm1431_vm2, %v3369_v59 }
 0x15c   : > { %v1652_v22 = vadd.f32 %v1651_v8, %v1650_v7  ;;  %v2039_v26 = vadd.f32 %v2038_v12, %v2037_v4 }
 0x15d   : > { %v2586_v30 = vpop.f32.mrb[48].mxu0 }
 0x15e   : > { %v2041_v44 = vadd.f32 %v2040_v32, %v2039_v26  ;;  %1482 = vst.msk [vmem:[%s2959_s9 + $0x190] sm:$0xff] %vm1431_vm2, %v2586_v30  ;;  %v1112_v48 = vpop.f32.mrb[49].mxu0  ;;  %v1654_v52 = vadd.f32 %v1653_v35, %v1652_v22  ;;  %v1871_v4 = vmul.f32 %v2586_v30, %v2586_v30  ;;  %v1659_v26 = vsel %vm1431_vm2, %v2586_v30, 0.0 }
 0x15f   : > { %1480 = vst.msk [vmem:[%s2959_s9 + $0x180] sm:$0xff] %vm1431_vm2, %v1112_v48  ;;  %v1655_v60 = vsel %vm1431_vm2, %v1112_v48, 0.0  ;;  %v1869_v62 = vmul.f32 %v1112_v48, %v1112_v48  ;;  %v2587_v63 = vpop.f32.mrb[50].mxu0 }
 0x160   : > { %v1656_v0 = vadd.f32 %v1655_v60, %v1654_v52  ;;  %v2043_v2 = vadd.f32 %v2042_v54, %v2041_v44  ;;  %1483 = vst.msk [vmem:[%s2959_s9 + $0x198] sm:$0xff] %vm1431_vm2, %v2587_v63  ;;  %v1115_v3 = vpop.f32.mrb[51].mxu0  ;;  %v1872_v32 = vmul.f32 %v2587_v63, %v2587_v63  ;;  %v3386_v44 = vpop.f32.mrb[44].mxu1  ;;  %v2048_v60 = vsel %vm1431_vm2, %v1871_v4, 0.0 }
 0x161   : > { %v2044_v7 = vsel %vm1431_vm2, %v1869_v62, 0.0  ;;  %1481 = vst.msk [vmem:[%s2959_s9 + $0x188] sm:$0xff] %vm1431_vm2, %v1115_v3  ;;  %v1657_v8 = vsel %vm1431_vm2, %v1115_v3, 0.0  ;;  %v1870_v11 = vmul.f32 %v1115_v3, %v1115_v3  ;;  %3892 = vst [vmem:[#allocation2_spill] sm:$0xff] %v3386_v44  ;;  %v3391_v54 = vpop.f32.mrb[45].mxu1  ;;  %v1661_v62 = vsel %vm1431_vm2, %v2587_v63, 0.0 }
 0x162   : > { %v2045_v12 = vadd.f32 %v2044_v7, %v2043_v2  ;;  %v1658_v22 = vadd.f32 %v1657_v8, %v1656_v0  ;;  %1542 = vst.msk [vmem:[%s2959_s9 + $0x370] sm:$0xff] %vm1431_vm2, %v3386_v44  ;;  %1540 = vst.msk [vmem:[%s2959_s9 + $0x360] sm:$0xff] %vm1431_vm2, %v3391_v54  ;;  %v3398_v0 = vpop.f32.mrb[46].mxu1  ;;  %v2050_v63 = vsel %vm1431_vm2, %v1872_v32, 0.0 }
 0x163   : > { %v2046_v35 = vsel %vm1431_vm2, %v1870_v11, 0.0  ;;  %3893 = vst [vmem:[#allocation3_spill] sm:$0xff] %v3398_v0  ;;  %1543 = vst.msk [vmem:[%s2959_s9 + $0x378] sm:$0xff] %vm1431_vm2, %v3398_v0  ;;  %v3405_v4 = vpop.f32.mrb[47].mxu1 }
 0x164   : > { %v1660_v48 = vadd.f32 %v1659_v26, %v1658_v22  ;;  %v2047_v52 = vadd.f32 %v2046_v35, %v2045_v12  ;;  %1541 = vst.msk [vmem:[%s2959_s9 + $0x368] sm:$0xff] %vm1431_vm2, %v3405_v4 }
 0x165   : > { %v2590_v30 = vpop.f32.mrb[52].mxu0 }
 0x166   : > { %v2049_v2 = vadd.f32 %v2048_v60, %v2047_v52  ;;  %1486 = vst.msk [vmem:[%s2959_s9 + $0x1b0] sm:$0xff] %vm1431_vm2, %v2590_v30  ;;  %v1128_v3 = vpop.f32.mrb[53].mxu0  ;;  %v1662_v7 = vadd.f32 %v1661_v62, %v1660_v48  ;;  %v1875_v48 = vmul.f32 %v2590_v30, %v2590_v30  ;;  %v1667_v0 = vsel %vm1431_vm2, %v2590_v30, 0.0 }
 0x167   : > { %1484 = vst.msk [vmem:[%s2959_s9 + $0x1a0] sm:$0xff] %vm1431_vm2, %v1128_v3  ;;  %v1663_v8 = vsel %vm1431_vm2, %v1128_v3, 0.0  ;;  %v1873_v11 = vmul.f32 %v1128_v3, %v1128_v3  ;;  %v2591_v12 = vpop.f32.mrb[54].mxu0 }
 0x168   : > { %v1664_v22 = vadd.f32 %v1663_v8, %v1662_v7  ;;  %v2051_v26 = vadd.f32 %v2050_v63, %v2049_v2  ;;  %1487 = vst.msk [vmem:[%s2959_s9 + $0x1b8] sm:$0xff] %vm1431_vm2, %v2591_v12  ;;  %v1131_v35 = vpop.f32.mrb[55].mxu0  ;;  %v1876_v7 = vmul.f32 %v2591_v12, %v2591_v12  ;;  %v3422_v63 = vpop.f32.mrb[48].mxu1 }
 0x169   : > { %v2052_v52 = vsel %vm1431_vm2, %v1873_v11, 0.0  ;;  %1485 = vst.msk [vmem:[%s2959_s9 + $0x1a8] sm:$0xff] %vm1431_vm2, %v1131_v35  ;;  %v1665_v32 = vsel %vm1431_vm2, %v1131_v35, 0.0  ;;  %v1874_v60 = vmul.f32 %v1131_v35, %v1131_v35  ;;  %3894 = vst [vmem:[#allocation4_spill] sm:$0xff] %v3422_v63  ;;  %v3427_v44 = vpop.f32.mrb[49].mxu1 }
 0x16a   : > { %v2053_v62 = vadd.f32 %v2052_v52, %v2051_v26  ;;  %v1666_v3 = vadd.f32 %v1665_v32, %v1664_v22  ;;  %1546 = vst.msk [vmem:[%s2959_s9 + $0x390] sm:$0xff] %vm1431_vm2, %v3422_v63  ;;  %3895 = vst [vmem:[#allocation5_spill] sm:$0xff] %v3427_v44  ;;  %v2056_v26 = vsel %vm1431_vm2, %v1875_v48, 0.0  ;;  %v1669_v22 = vsel %vm1431_vm2, %v2591_v12, 0.0  ;;  %v3434_v35 = vpop.f32.mrb[50].mxu1 }
 0x16b   : > { %v2054_v2 = vsel %vm1431_vm2, %v1874_v60, 0.0  ;;  %1544 = vst.msk [vmem:[%s2959_s9 + $0x380] sm:$0xff] %vm1431_vm2, %v3427_v44  ;;  %3896 = vst [vmem:[#allocation6_spill] sm:$0xff] %v3434_v35  ;;  %v3441_v48 = vpop.f32.mrb[51].mxu1  ;;  %v2058_v12 = vsel %vm1431_vm2, %v1876_v7, 0.0 }
 0x16c   : > { %v1668_v8 = vadd.f32 %v1667_v0, %v1666_v3  ;;  %v2055_v11 = vadd.f32 %v2054_v2, %v2053_v62  ;;  %1547 = vst.msk [vmem:[%s2959_s9 + $0x398] sm:$0xff] %vm1431_vm2, %v3434_v35  ;;  %3897 = vst [vmem:[#allocation7_spill] sm:$0xff] %v3441_v48 }
 0x16d   : > { %v2594_v30 = vpop.f32.mrb[56].mxu0  ;;  %1545 = vst.msk [vmem:[%s2959_s9 + $0x388] sm:$0xff] %vm1431_vm2, %v3441_v48 }
 0x16e   : > { %v2057_v0 = vadd.f32 %v2056_v26, %v2055_v11  ;;  %1490 = vst.msk [vmem:[%s2959_s9 + $0x1d0] sm:$0xff] %vm1431_vm2, %v2594_v30  ;;  %v1144_v52 = vpop.f32.mrb[57].mxu0  ;;  %v1670_v32 = vadd.f32 %v1669_v22, %v1668_v8  ;;  %v1879_v26 = vmul.f32 %v2594_v30, %v2594_v30  ;;  %v1675_v48 = vsel %vm1431_vm2, %v2594_v30, 0.0 }
 0x16f   : > { %1488 = vst.msk [vmem:[%s2959_s9 + $0x1c0] sm:$0xff] %vm1431_vm2, %v1144_v52  ;;  %v1671_v60 = vsel %vm1431_vm2, %v1144_v52, 0.0  ;;  %v1877_v62 = vmul.f32 %v1144_v52, %v1144_v52  ;;  %v2595_v3 = vpop.f32.mrb[58].mxu0 }
 0x170   : > { %v1672_v2 = vadd.f32 %v1671_v60, %v1670_v32  ;;  %v2059_v11 = vadd.f32 %v2058_v12, %v2057_v0  ;;  %1491 = vst.msk [vmem:[%s2959_s9 + $0x1d8] sm:$0xff] %vm1431_vm2, %v2595_v3  ;;  %v1147_v8 = vpop.f32.mrb[59].mxu0  ;;  %v1880_v32 = vmul.f32 %v2595_v3, %v2595_v3  ;;  %v3458_v12 = vpop.f32.mrb[52].mxu1 }
 0x171   : > { %v2060_v22 = vsel %vm1431_vm2, %v1877_v62, 0.0  ;;  %1489 = vst.msk [vmem:[%s2959_s9 + $0x1c8] sm:$0xff] %vm1431_vm2, %v1147_v8  ;;  %v1673_v7 = vsel %vm1431_vm2, %v1147_v8, 0.0  ;;  %v1878_v35 = vmul.f32 %v1147_v8, %v1147_v8  ;;  %3898 = vst [vmem:[#allocation8_spill] sm:$0xff] %v3458_v12  ;;  %v3463_v44 = vpop.f32.mrb[53].mxu1 }
 0x172   : > { %v2061_v52 = vadd.f32 %v2060_v22, %v2059_v11  ;;  %v1674_v63 = vadd.f32 %v1673_v7, %v1672_v2  ;;  %1550 = vst.msk [vmem:[%s2959_s9 + $0x3b0] sm:$0xff] %vm1431_vm2, %v3458_v12  ;;  %3899 = vst [vmem:[#allocation9_spill] sm:$0xff] %v3463_v44  ;;  %v2064_v11 = vsel %vm1431_vm2, %v1879_v26, 0.0  ;;  %v1677_v2 = vsel %vm1431_vm2, %v2595_v3, 0.0 }
 0x173   : > { %v2062_v0 = vsel %vm1431_vm2, %v1878_v35, 0.0  ;;  %1548 = vst.msk [vmem:[%s2959_s9 + $0x3a0] sm:$0xff] %vm1431_vm2, %v3463_v44  ;;  %v3470_v35 = vpop.f32.mrb[54].mxu1  ;;  %v2066_v3 = vsel %vm1431_vm2, %v1880_v32, 0.0 }
 0x174   : > { %v1676_v60 = vadd.f32 %v1675_v48, %v1674_v63  ;;  %v2063_v62 = vadd.f32 %v2062_v0, %v2061_v52  ;;  %3900 = vst [vmem:[#allocation10_spill] sm:$0xff] %v3470_v35  ;;  %1551 = vst.msk [vmem:[%s2959_s9 + $0x3b8] sm:$0xff] %vm1431_vm2, %v3470_v35  ;;  %v3477_v26 = vpop.f32.mrb[55].mxu1 }
 0x175   : > { %v2598_v30 = vpop.f32.mrb[60].mxu0  ;;  %3901 = vst [vmem:[#allocation11_spill] sm:$0xff] %v3477_v26  ;;  %1549 = vst.msk [vmem:[%s2959_s9 + $0x3a8] sm:$0xff] %vm1431_vm2, %v3477_v26 }
 0x176   : > { %v2065_v63 = vadd.f32 %v2064_v11, %v2063_v62  ;;  %1494 = vst.msk [vmem:[%s2959_s9 + $0x1f0] sm:$0xff] %vm1431_vm2, %v2598_v30  ;;  %v1160_v48 = vpop.f32.mrb[61].mxu0  ;;  %v1678_v8 = vadd.f32 %v1677_v2, %v1676_v60  ;;  %v1883_v11 = vmul.f32 %v2598_v30, %v2598_v30  ;;  %v1683_v44 = vsel %vm1431_vm2, %v2598_v30, 0.0 }
 0x177   : > { %1492 = vst.msk [vmem:[%s2959_s9 + $0x1e0] sm:$0xff] %vm1431_vm2, %v1160_v48  ;;  %v1679_v22 = vsel %vm1431_vm2, %v1160_v48, 0.0  ;;  %v1881_v7 = vmul.f32 %v1160_v48, %v1160_v48  ;;  %v2599_v52 = vpop.f32.mrb[62].mxu0 }
 0x178   : > { %v1680_v0 = vadd.f32 %v1679_v22, %v1678_v8  ;;  %v2067_v62 = vadd.f32 %v2066_v3, %v2065_v63  ;;  %1495 = vst.msk [vmem:[%s2959_s9 + $0x1f8] sm:$0xff] %vm1431_vm2, %v2599_v52  ;;  %v1163_v60 = vpop.f32.mrb[63].mxu0  ;;  %v1884_v8 = vmul.f32 %v2599_v52, %v2599_v52  ;;  %v1885_v3 = vmul.f32 %v2995_v49, %v2995_v49  ;;  %v3496_v22 = vpop.f32.mrb[56].mxu1 }
 0x179   : > { %v2068_v2 = vsel %vm1431_vm2, %v1881_v7, 0.0  ;;  %1493 = vst.msk [vmem:[%s2959_s9 + $0x1e8] sm:$0xff] %vm1431_vm2, %v1163_v60  ;;  %v1681_v32 = vsel %vm1431_vm2, %v1163_v60, 0.0  ;;  %v1882_v35 = vmul.f32 %v1163_v60, %v1163_v60  ;;  %1554 = vst.msk [vmem:[%s2959_s9 + $0x3d0] sm:$0xff] %vm1431_vm2, %v3496_v22  ;;  %v3501_v60 = vpop.f32.mrb[57].mxu1  ;;  %v1685_v30 = vsel %vm1431_vm2, %v2599_v52, 0.0 }
 0x17a   : > { %v2069_v48 = vadd.f32 %v2068_v2, %v2067_v62  ;;  %v1682_v12 = vadd.f32 %v1681_v32, %v1680_v0  ;;  %v2072_v0 = vsel %vm1431_vm2, %v1883_v11, 0.0  ;;  %1552 = vst.msk [vmem:[%s2959_s9 + $0x3c0] sm:$0xff] %vm1431_vm2, %v3501_v60  ;;  %v3510_v62 = vpop.f32.mrb[58].mxu1  ;;  %v2074_v32 = vsel %vm1431_vm2, %v1884_v8, 0.0 }
 0x17b   : > { %v2070_v63 = vsel %vm1431_vm2, %v1882_v35, 0.0  ;;  %v1687_v35 = vsel %vm1431_vm2, %v2995_v49, 0.0  ;;  %1555 = vst.msk [vmem:[%s2959_s9 + $0x3d8] sm:$0xff] %vm1431_vm2, %v3510_v62  ;;  %v3515_v2 = vpop.f32.mrb[59].mxu1  ;;  %v2076_v11 = vsel %vm1431_vm2, %v1885_v3, 0.0  ;;  %v1886_v49 = vmul.f32 %v3009_v57, %v3009_v57 }
 0x17c   : > { %v1684_v7 = vadd.f32 %v1683_v44, %v1682_v12  ;;  %v2071_v26 = vadd.f32 %v2070_v63, %v2069_v48  ;;  %1553 = vst.msk [vmem:[%s2959_s9 + $0x3c8] sm:$0xff] %vm1431_vm2, %v3515_v2  ;;  %v1689_v63 = vsel %vm1431_vm2, %v3009_v57, 0.0  ;;  %v1691_v3 = vsel %vm1431_vm2, %v2990_v46, 0.0 }
 0x17e   : > { %v1686_v44 = vadd.f32 %v1685_v30, %v1684_v7  ;;  %v2073_v12 = vadd.f32 %v2072_v0, %v2071_v26  ;;  %v1887_v26 = vmul.f32 %v2990_v46, %v2990_v46  ;;  %v1888_v0 = vmul.f32 %v3002_v53, %v3002_v53 }
 0x17f   : > { %v2078_v30 = vsel %vm1431_vm2, %v1886_v49, 0.0  ;;  %v1695_v49 = vsel %vm1431_vm2, %v3031_v13, 0.0 }
 0x180   : > { %v2075_v52 = vadd.f32 %v2074_v32, %v2073_v12  ;;  %v1688_v48 = vadd.f32 %v1687_v35, %v1686_v44  ;;  %v1889_v35 = vmul.f32 %v3031_v13, %v3031_v13  ;;  %v3535_v44 = vpop.f32.mrb[60].mxu1  ;;  %v2080_v46 = vsel %vm1431_vm2, %v1887_v26, 0.0 }
 0x181   : > { %1558 = vst.msk [vmem:[%s2959_s9 + $0x3f0] sm:$0xff] %vm1431_vm2, %v3535_v44  ;;  %v3540_v57 = vpop.f32.mrb[61].mxu1  ;;  %v2082_v26 = vsel %vm1431_vm2, %v1888_v0, 0.0  ;;  %v1699_v0 = vsel %vm1431_vm2, %v3026_v10, 0.0 }
 0x182   : > { %v2077_v7 = vadd.f32 %v2076_v11, %v2075_v52  ;;  %v1690_v8 = vadd.f32 %v1689_v63, %v1688_v48  ;;  %v1693_v11 = vsel %vm1431_vm2, %v3002_v53, 0.0  ;;  %1556 = vst.msk [vmem:[%s2959_s9 + $0x3e0] sm:$0xff] %vm1431_vm2, %v3540_v57  ;;  %v3550_v52 = vpop.f32.mrb[62].mxu1  ;;  %v1890_v53 = vmul.f32 %v3045_v21, %v3045_v21 }
 0x183   : > { %3902 = vst [vmem:[#allocation12_spill] sm:$0xff] %v3550_v52  ;;  %1559 = vst.msk [vmem:[%s2959_s9 + $0x3f8] sm:$0xff] %vm1431_vm2, %v3550_v52 }
 0x184   : > { %v1692_v12 = vadd.f32 %v1691_v3, %v1690_v8  ;;  %v2079_v32 = vadd.f32 %v2078_v30, %v2077_v7  ;;  %v3555_v7 = vpop.f32.mrb[63].mxu1  ;;  %v2084_v8 = vsel %vm1431_vm2, %v1889_v35, 0.0  ;;  %v1891_v30 = vmul.f32 %v3026_v10, %v3026_v10 }
 0x185   : > { %1557 = vst.msk [vmem:[%s2959_s9 + $0x3e8] sm:$0xff] %vm1431_vm2, %v3555_v7  ;;  %v1892_v35 = vmul.f32 %v3038_v17, %v3038_v17 }
 0x186   : > { %v2081_v48 = vadd.f32 %v2080_v46, %v2079_v32  ;;  %v1694_v63 = vadd.f32 %v1693_v11, %v1692_v12  ;;  %v1697_v12 = vsel %vm1431_vm2, %v3045_v21, 0.0  ;;  %v2086_v11 = vsel %vm1431_vm2, %v1890_v53, 0.0 }
 0x187   : > { %v1701_v21 = vsel %vm1431_vm2, %v3038_v17, 0.0  ;;  %v1894_v53 = vmul.f32 %v3081_v51, %v3081_v51  ;;  %v1705_v17 = vsel %vm1431_vm2, %v3081_v51, 0.0  ;;  %v1709_v51 = vsel %vm1431_vm2, %v3074_v45, 0.0 }
 0x188   : > { %v1696_v13 = vadd.f32 %v1695_v49, %v1694_v63  ;;  %v2083_v3 = vadd.f32 %v2082_v26, %v2081_v48  ;;  %v1893_v49 = vmul.f32 %v3067_v41, %v3067_v41  ;;  %v2088_v26 = vsel %vm1431_vm2, %v1891_v30, 0.0 }
 0x189   : > { %v1895_v30 = vmul.f32 %v3062_v38, %v3062_v38 }
 0x18a   : > { %v2085_v32 = vadd.f32 %v2084_v8, %v2083_v3  ;;  %v1698_v46 = vadd.f32 %v1697_v12, %v1696_v13  ;;  %v1703_v8 = vsel %vm1431_vm2, %v3067_v41, 0.0  ;;  %v2090_v3 = vsel %vm1431_vm2, %v1892_v35, 0.0 }
 0x18b   : > { %v2092_v12 = vsel %vm1431_vm2, %v1893_v49, 0.0  ;;  %v1707_v41 = vsel %vm1431_vm2, %v3062_v38, 0.0  ;;  %v1896_v35 = vmul.f32 %v3074_v45, %v3074_v45  ;;  %v1897_v49 = vmul.f32 %v3103_v9, %v3103_v9 }
 0x18c   : > { %v1700_v48 = vadd.f32 %v1699_v0, %v1698_v46  ;;  %v2087_v63 = vadd.f32 %v2086_v11, %v2085_v32  ;;  %v2094_v11 = vsel %vm1431_vm2, %v1894_v53, 0.0  ;;  %v1899_v53 = vmul.f32 %v3098_v6, %v3098_v6 }
 0x18d   : > { %v1713_v45 = vsel %vm1431_vm2, %v3117_v20, 0.0 }
 0x18e   : > { %v2089_v13 = vadd.f32 %v2088_v26, %v2087_v63  ;;  %v1702_v10 = vadd.f32 %v1701_v21, %v1700_v48  ;;  %v2096_v26 = vsel %vm1431_vm2, %v1895_v30, 0.0 }
 0x190   : > { %v1704_v52 = vadd.f32 %v1703_v8, %v1702_v10  ;;  %v2091_v46 = vadd.f32 %v2090_v3, %v2089_v13  ;;  %v2098_v8 = vsel %vm1431_vm2, %v1896_v35, 0.0  ;;  %v2100_v13 = vsel %vm1431_vm2, %v1897_v49, 0.0 }
 0x191   : > { %v1898_v10 = vmul.f32 %v3117_v20, %v3117_v20  ;;  %v1717_v20 = vsel %vm1431_vm2, %v3110_v15, 0.0  ;;  %v1719_v49 = vsel %vm1431_vm2, %v3139_v43, 0.0 }
 0x192   : > { %v2093_v32 = vadd.f32 %v2092_v12, %v2091_v46  ;;  %v1706_v0 = vadd.f32 %v1705_v17, %v1704_v52  ;;  %v1711_v52 = vsel %vm1431_vm2, %v3103_v9, 0.0  ;;  %v1715_v9 = vsel %vm1431_vm2, %v3098_v6, 0.0 }
 0x193   : > { %v1900_v17 = vmul.f32 %v3110_v15, %v3110_v15  ;;  %v1721_v15 = vsel %vm1431_vm2, %v3153_v56, 0.0 }
 0x194   : > { %v1708_v48 = vadd.f32 %v1707_v41, %v1706_v0  ;;  %v2095_v63 = vadd.f32 %v2094_v11, %v2093_v32  ;;  %v2102_v32 = vsel %vm1431_vm2, %v1898_v10, 0.0  ;;  %v1901_v0 = vmul.f32 %v3139_v43, %v3139_v43 }
 0x195   : > { %v2104_v11 = vsel %vm1431_vm2, %v1899_v53, 0.0  ;;  %v1723_v43 = vsel %vm1431_vm2, %v3134_v39, 0.0  ;;  %v1904_v10 = vmul.f32 %v3146_v50, %v3146_v50 }
 0x196   : > { %v2097_v21 = vadd.f32 %v2096_v26, %v2095_v63  ;;  %v1710_v38 = vadd.f32 %v1709_v51, %v1708_v48  ;;  %v2106_v63 = vsel %vm1431_vm2, %v1900_v17, 0.0  ;;  %v2108_v26 = vsel %vm1431_vm2, %v1901_v0, 0.0 }
 0x197   : > { %v1902_v51 = vmul.f32 %v3153_v56, %v3153_v56  ;;  %v1725_v56 = vsel %vm1431_vm2, %v3146_v50, 0.0  ;;  %v2114_v17 = vsel %vm1431_vm2, %v1904_v10, 0.0  ;;  %v1906_v0 = vmul.f32 %v3189_v29, %v3189_v29 }
 0x198   : > { %v1712_v3 = vadd.f32 %v1711_v52, %v1710_v38  ;;  %v2099_v12 = vadd.f32 %v2098_v8, %v2097_v21  ;;  %v1903_v38 = vmul.f32 %v3134_v39, %v3134_v39  ;;  %v1729_v50 = vsel %vm1431_vm2, %v3189_v29, 0.0 }
 0x199   : > { %v1733_v29 = vsel %vm1431_vm2, %v3182_v25, 0.0 }
 0x19a   : > { %v2101_v46 = vadd.f32 %v2100_v13, %v2099_v12  ;;  %v1714_v30 = vadd.f32 %v1713_v45, %v1712_v3  ;;  %v2110_v3 = vsel %vm1431_vm2, %v1902_v51, 0.0  ;;  %v1905_v12 = vmul.f32 %v3175_v19, %v3175_v19 }
 0x19c   : > { %v1716_v41 = vadd.f32 %v1715_v9, %v1714_v30  ;;  %v2103_v35 = vadd.f32 %v2102_v32, %v2101_v46  ;;  %v2112_v46 = vsel %vm1431_vm2, %v1903_v38, 0.0  ;;  %v1727_v30 = vsel %vm1431_vm2, %v3175_v19, 0.0 }
 0x19d   : > { %v2116_v32 = vsel %vm1431_vm2, %v1905_v12, 0.0  ;;  %v1731_v19 = vsel %vm1431_vm2, %v3170_v14, 0.0 }
 0x19e   : > { %v2105_v48 = vadd.f32 %v2104_v11, %v2103_v35  ;;  %v1718_v6 = vadd.f32 %v1717_v20, %v1716_v41  ;;  %v1907_v11 = vmul.f32 %v3170_v14, %v3170_v14 }
 0x1a0   : > { %v1720_v52 = vadd.f32 %v1719_v49, %v1718_v6  ;;  %v2107_v21 = vadd.f32 %v2106_v63, %v2105_v48  ;;  %v1908_v48 = vmul.f32 %v3182_v25, %v3182_v25  ;;  %v2118_v6 = vsel %vm1431_vm2, %v1906_v0, 0.0 }
 0x1a1   : > { %v1909_v63 = vmul.f32 %v3211_v61, %v3211_v61  ;;  %v1737_v25 = vsel %vm1431_vm2, %v3225_v5, 0.0 }
 0x1a2   : > { %v2109_v8 = vadd.f32 %v2108_v26, %v2107_v21  ;;  %v1722_v13 = vadd.f32 %v1721_v15, %v1720_v52  ;;  %v2120_v52 = vsel %vm1431_vm2, %v1907_v11, 0.0  ;;  %v1735_v21 = vsel %vm1431_vm2, %v3211_v61, 0.0 }
 0x1a3   : > { %v2122_v15 = vsel %vm1431_vm2, %v1908_v48, 0.0  ;;  %v1739_v61 = vsel %vm1431_vm2, %v3206_v58, 0.0  ;;  %v1916_v48 = vmul.f32 %v3254_v47, %v3254_v47 }
 0x1a4   : > { %v1724_v53 = vadd.f32 %v1723_v43, %v1722_v13  ;;  %v2111_v45 = vadd.f32 %v2110_v3, %v2109_v8  ;;  %v2124_v8 = vsel %vm1431_vm2, %v1909_v63, 0.0  ;;  %v1910_v13 = vmul.f32 %v3225_v5, %v3225_v5 }
 0x1a5   : > { %v1911_v3 = vmul.f32 %v3206_v58, %v3206_v58  ;;  %v1741_v5 = vsel %vm1431_vm2, %v3218_v1, 0.0  ;;  %v1917_v63 = vmul.f32 %v3283_v28, %v3283_v28 }
 0x1a6   : > { %v2113_v9 = vadd.f32 %v2112_v46, %v2111_v45  ;;  %v1726_v39 = vadd.f32 %v1725_v56, %v1724_v53  ;;  %v1912_v45 = vmul.f32 %v3218_v1, %v3218_v1  ;;  %v2126_v46 = vsel %vm1431_vm2, %v1910_v13, 0.0 }
 0x1a7   : > { %v1913_v56 = vmul.f32 %v3247_v37, %v3247_v37  ;;  %v1745_v1 = vsel %vm1431_vm2, %v3261_v55, 0.0 }
 0x1a8   : > { %v1728_v41 = vadd.f32 %v1727_v30, %v1726_v39  ;;  %v2115_v35 = vadd.f32 %v2114_v17, %v2113_v9  ;;  %v2128_v39 = vsel %vm1431_vm2, %v1911_v3, 0.0  ;;  %v1743_v17 = vsel %vm1431_vm2, %v3247_v37, 0.0 }
 0x1a9   : > { %v2130_v0 = vsel %vm1431_vm2, %v1912_v45, 0.0  ;;  %v1747_v37 = vsel %vm1431_vm2, %v3242_v34, 0.0 }
 0x1aa   : > { %v2117_v20 = vadd.f32 %v2116_v32, %v2115_v35  ;;  %v1730_v49 = vadd.f32 %v1729_v50, %v1728_v41  ;;  %v2132_v41 = vsel %vm1431_vm2, %v1913_v56, 0.0  ;;  %v1914_v35 = vmul.f32 %v3261_v55, %v3261_v55 }
 0x1ab   : > { %v1749_v55 = vsel %vm1431_vm2, %v3254_v47, 0.0  ;;  %v1753_v47 = vsel %vm1431_vm2, %v3297_v42, 0.0  ;;  %v1759_v56 = vsel %vm1431_vm2, %v3319_v23, 0.0 }
 0x1ac   : > { %v1732_v26 = vadd.f32 %v1731_v19, %v1730_v49  ;;  %v2119_v51 = vadd.f32 %v2118_v6, %v2117_v20  ;;  %v1915_v20 = vmul.f32 %v3242_v34, %v3242_v34  ;;  %v2134_v6 = vsel %vm1431_vm2, %v1914_v35, 0.0 }
 0x1ad   : > { %v1924_v35 = vmul.f32 %v3326_v31, %v3326_v31 }
 0x1ae   : > { %v2121_v38 = vadd.f32 %v2120_v52, %v2119_v51  ;;  %v1734_v14 = vadd.f32 %v1733_v29, %v1732_v26  ;;  %v2136_v52 = vsel %vm1431_vm2, %v1915_v20, 0.0  ;;  %v1751_v29 = vsel %vm1431_vm2, %v3283_v28, 0.0 }
 0x1af   : > { %v1755_v28 = vsel %vm1431_vm2, %v3278_v24, 0.0 }
 0x1b0   : > { %v1736_v43 = vadd.f32 %v1735_v21, %v1734_v14  ;;  %v2123_v10 = vadd.f32 %v2122_v15, %v2121_v38  ;;  %v2138_v38 = vsel %vm1431_vm2, %v1916_v48, 0.0  ;;  %v2140_v14 = vsel %vm1431_vm2, %v1917_v63, 0.0 }
 0x1b1   : > { %v1918_v15 = vmul.f32 %v3297_v42, %v3297_v42  ;;  %v1757_v42 = vsel %vm1431_vm2, %v3290_v33, 0.0  ;;  %v2154_v48 = vsel %vm1431_vm2, %v1924_v35, 0.0  ;;  %v1926_v63 = vmul.f32 %v3369_v59, %v3369_v59 }
 0x1b2   : > { %v2125_v12 = vadd.f32 %v2124_v8, %v2123_v10  ;;  %v1738_v53 = vadd.f32 %v1737_v25, %v1736_v43  ;;  %v1919_v43 = vmul.f32 %v3278_v24, %v3278_v24  ;;  %v1920_v25 = vmul.f32 %v3290_v33, %v3290_v33 }
 0x1b3   : > { %v1761_v33 = vsel %vm1431_vm2, %v3333_v40, 0.0 }
 0x1b4   : > { %v1740_v30 = vadd.f32 %v1739_v61, %v1738_v53  ;;  %v2127_v9 = vadd.f32 %v2126_v46, %v2125_v12  ;;  %v2142_v12 = vsel %vm1431_vm2, %v1918_v15, 0.0  ;;  %v1921_v53 = vmul.f32 %v3319_v23, %v3319_v23 }
 0x1b5   : > { %v2144_v46 = vsel %vm1431_vm2, %v1919_v43, 0.0  ;;  %v1763_v23 = vsel %vm1431_vm2, %v3314_v16, 0.0 }
 0x1b6   : > { %v2129_v32 = vadd.f32 %v2128_v39, %v2127_v9  ;;  %v1742_v58 = vadd.f32 %v1741_v5, %v1740_v30  ;;  %v2146_v9 = vsel %vm1431_vm2, %v1920_v25, 0.0  ;;  %v2148_v39 = vsel %vm1431_vm2, %v1921_v53, 0.0 }
 0x1b7   : > { %v1922_v5 = vmul.f32 %v3333_v40, %v3333_v40  ;;  %v1765_v40 = vsel %vm1431_vm2, %v3326_v31, 0.0  ;;  %v1769_v31 = vsel %vm1431_vm2, %v3369_v59, 0.0  ;;  %v1773_v59 = vsel %vm1431_vm2, %v3362_v36, 0.0 }
 0x1b8   : > { %v1744_v11 = vadd.f32 %v1743_v17, %v1742_v58  ;;  %v2131_v50 = vadd.f32 %v2130_v0, %v2129_v32  ;;  %v1923_v58 = vmul.f32 %v3314_v16, %v3314_v16 }
 0x1ba   : > { %v2133_v49 = vadd.f32 %v2132_v41, %v2131_v50  ;;  %v1746_v19 = vadd.f32 %v1745_v1, %v1744_v11  ;;  %v2150_v11 = vsel %vm1431_vm2, %v1922_v5, 0.0  ;;  %v1925_v50 = vmul.f32 %v3355_v27, %v3355_v27 }
 0x1bc   : > { %v1748_v26 = vadd.f32 %v1747_v37, %v1746_v19  ;;  %v2135_v51 = vadd.f32 %v2134_v6, %v2133_v49  ;;  %v2152_v49 = vsel %vm1431_vm2, %v1923_v58, 0.0  ;;  %v1767_v19 = vsel %vm1431_vm2, %v3355_v27, 0.0 }
 0x1bd   : > { %v2156_v6 = vsel %vm1431_vm2, %v1925_v50, 0.0  ;;  %v1771_v27 = vsel %vm1431_vm2, %v3350_v18, 0.0  ;;  %v3907_v50 = vld [vmem:[#allocation4_spill] sm:$0xff] }
 0x1be   : > { %v2137_v21 = vadd.f32 %v2136_v52, %v2135_v51  ;;  %v1750_v34 = vadd.f32 %v1749_v55, %v1748_v26  ;;  %v1927_v52 = vmul.f32 %v3350_v18, %v3350_v18 }
 0x1c0   : > { %v1752_v8 = vadd.f32 %v1751_v29, %v1750_v34  ;;  %v2139_v13 = vadd.f32 %v2138_v38, %v2137_v21  ;;  %v1928_v21 = vmul.f32 %v3362_v36, %v3362_v36  ;;  %v2158_v34 = vsel %vm1431_vm2, %v1926_v63, 0.0 }
 0x1c1   : > { %v1929_v38 = vmul.f32 %v3391_v54, %v3391_v54  ;;  %v1777_v36 = vsel %vm1431_vm2, %v3405_v4, 0.0 }
 0x1c2   : > { %v2141_v10 = vadd.f32 %v2140_v14, %v2139_v13  ;;  %v1754_v3 = vadd.f32 %v1753_v47, %v1752_v8  ;;  %v2160_v8 = vsel %vm1431_vm2, %v1927_v52, 0.0  ;;  %v1775_v13 = vsel %vm1431_vm2, %v3391_v54, 0.0 }
 0x1c3   : > { %v2162_v47 = vsel %vm1431_vm2, %v1928_v21, 0.0 }
 0x1c4   : > { %v1756_v61 = vadd.f32 %v1755_v28, %v1754_v3  ;;  %v2143_v45 = vadd.f32 %v2142_v12, %v2141_v10  ;;  %v2164_v10 = vsel %vm1431_vm2, %v1929_v38, 0.0  ;;  %v1930_v3 = vmul.f32 %v3405_v4, %v3405_v4  ;;  %v3903_v12 = vld [vmem:[#allocation2_spill] sm:$0xff]  ;;  %v3910_v38 = vld [vmem:[#allocation11_spill] sm:$0xff] }
 0x1c5   : > { %v1931_v53 = vmul.f32 %v3903_v12, %v3903_v12  ;;  %v1779_v54 = vsel %vm1431_vm2, %v3903_v12, 0.0  ;;  %v1941_v12 = vmul.f32 %v3501_v60, %v3501_v60 }
 0x1c6   : > { %v2145_v30 = vadd.f32 %v2144_v46, %v2143_v45  ;;  %v1758_v24 = vadd.f32 %v1757_v42, %v1756_v61  ;;  %v3904_v46 = vld [vmem:[#allocation3_spill] sm:$0xff] }
 0x1c7   : > { %v1932_v42 = vmul.f32 %v3904_v46, %v3904_v46  ;;  %v2168_v5 = vsel %vm1431_vm2, %v1931_v53, 0.0  ;;  %v1781_v4 = vsel %vm1431_vm2, %v3904_v46, 0.0 }
 0x1c8   : > { %v1760_v17 = vadd.f32 %v1759_v56, %v1758_v24  ;;  %v2147_v32 = vadd.f32 %v2146_v9, %v2145_v30  ;;  %v2166_v56 = vsel %vm1431_vm2, %v1930_v3, 0.0  ;;  %v3905_v30 = vld [vmem:[#allocation5_spill] sm:$0xff]  ;;  %v3912_v3 = vld [vmem:[#allocation10_spill] sm:$0xff] }
 0x1c9   : > { %v1933_v24 = vmul.f32 %v3905_v30, %v3905_v30 }
 0x1ca   : > { %v2149_v0 = vadd.f32 %v2148_v39, %v2147_v32  ;;  %v1762_v41 = vadd.f32 %v1761_v33, %v1760_v17  ;;  %v1783_v17 = vsel %vm1431_vm2, %v3905_v30, 0.0  ;;  %v2170_v33 = vsel %vm1431_vm2, %v1932_v42, 0.0 }
 0x1cb   : > { %v2188_v30 = vsel %vm1431_vm2, %v1941_v12, 0.0 }
 0x1cc   : > { %v1764_v20 = vadd.f32 %v1763_v23, %v1762_v41  ;;  %v2151_v1 = vadd.f32 %v2150_v11, %v2149_v0  ;;  %v2172_v0 = vsel %vm1431_vm2, %v1933_v24, 0.0  ;;  %v3906_v41 = vld [vmem:[#allocation7_spill] sm:$0xff]  ;;  %v1942_v24 = vmul.f32 %v3515_v2, %v3515_v2 }
 0x1cd   : > { %v1934_v23 = vmul.f32 %v3906_v41, %v3906_v41 }
 0x1ce   : > { %v2153_v37 = vadd.f32 %v2152_v49, %v2151_v1  ;;  %v1766_v16 = vadd.f32 %v1765_v40, %v1764_v20  ;;  %v1935_v20 = vmul.f32 %v3907_v50, %v3907_v50  ;;  %v1785_v1 = vsel %vm1431_vm2, %v3906_v41, 0.0 }
 0x1d0   : > { %v1768_v26 = vadd.f32 %v1767_v19, %v1766_v16  ;;  %v2155_v51 = vadd.f32 %v2154_v48, %v2153_v37  ;;  %v1787_v19 = vsel %vm1431_vm2, %v3907_v50, 0.0  ;;  %v3908_v37 = vld [vmem:[#allocation6_spill] sm:$0xff]  ;;  %v2174_v48 = vsel %vm1431_vm2, %v1934_v23, 0.0 }
 0x1d1   : > { %v1936_v16 = vmul.f32 %v3908_v37, %v3908_v37  ;;  %v2176_v52 = vsel %vm1431_vm2, %v1935_v20, 0.0 }
 0x1d2   : > { %v2157_v55 = vadd.f32 %v2156_v6, %v2155_v51  ;;  %v1770_v29 = vadd.f32 %v1769_v31, %v1768_v26  ;;  %v3909_v6 = vld [vmem:[#allocation9_spill] sm:$0xff]  ;;  %v1789_v31 = vsel %vm1431_vm2, %v3908_v37, 0.0  ;;  %v1947_v37 = vmul.f32 %v3535_v44, %v3535_v44 }
 0x1d3   : > { %v1937_v63 = vmul.f32 %v3909_v6, %v3909_v6  ;;  %v2178_v21 = vsel %vm1431_vm2, %v1936_v16, 0.0 }
 0x1d4   : > { %v1772_v14 = vadd.f32 %v1771_v27, %v1770_v29  ;;  %v2159_v15 = vadd.f32 %v2158_v34, %v2157_v55  ;;  %v1791_v55 = vsel %vm1431_vm2, %v3909_v6, 0.0  ;;  %v3913_v6 = vld [vmem:[#allocation12_spill] sm:$0xff] }
 0x1d5   : > { %v2180_v34 = vsel %vm1431_vm2, %v1937_v63, 0.0  ;;  %v1948_v63 = vmul.f32 %v3913_v6, %v3913_v6 }
 0x1d6   : > { %v2161_v43 = vadd.f32 %v2160_v8, %v2159_v15  ;;  %v1774_v18 = vadd.f32 %v1773_v59, %v1772_v14  ;;  %v1938_v14 = vmul.f32 %v3910_v38, %v3910_v38  ;;  %v3911_v59 = vld [vmem:[#allocation8_spill] sm:$0xff] }
 0x1d8   : > { %v1776_v28 = vadd.f32 %v1775_v13, %v1774_v18  ;;  %v2163_v25 = vadd.f32 %v2162_v47, %v2161_v43  ;;  %v1939_v13 = vmul.f32 %v3911_v59, %v3911_v59  ;;  %v1793_v43 = vsel %vm1431_vm2, %v3910_v38, 0.0 }
 0x1da   : > { %v2165_v61 = vadd.f32 %v2164_v10, %v2163_v25  ;;  %v1778_v45 = vadd.f32 %v1777_v36, %v1776_v28  ;;  %v1795_v10 = vsel %vm1431_vm2, %v3911_v59, 0.0  ;;  %v1940_v28 = vmul.f32 %v3912_v3, %v3912_v3 }
 0x1db   : > { %v2182_v25 = vsel %vm1431_vm2, %v1938_v14, 0.0  ;;  %v2210_v14 = vlaneseq }
 0x1dc   : > { %v1780_v9 = vadd.f32 %v1779_v54, %v1778_v45  ;;  %v2167_v39 = vadd.f32 %v2166_v56, %v2165_v61  ;;  %v2184_v61 = vsel %vm1431_vm2, %v1939_v13, 0.0  ;;  %v1797_v45 = vsel %vm1431_vm2, %v3912_v3, 0.0 }
 0x1dd   : > { %v1799_v54 = vsel %vm1431_vm2, %v3501_v60, 0.0  ;;  %v2186_v56 = vsel %vm1431_vm2, %v1940_v28, 0.0  ;;  %v1803_v60 = vsel %vm1431_vm2, %v3496_v22, 0.0 }
 0x1de   : > { %v2169_v32 = vadd.f32 %v2168_v5, %v2167_v39  ;;  %v1782_v58 = vadd.f32 %v1781_v4, %v1780_v9  ;;  %v1943_v5 = vmul.f32 %v3496_v22, %v3496_v22  ;;  %v1801_v4 = vsel %vm1431_vm2, %v3515_v2, 0.0 }
 0x1df   : > { %v1805_v2 = vsel %vm1431_vm2, %v3510_v62, 0.0 }
 0x1e0   : > { %v1784_v35 = vadd.f32 %v1783_v17, %v1782_v58  ;;  %v2171_v11 = vadd.f32 %v2170_v33, %v2169_v32  ;;  %v1944_v58 = vmul.f32 %v3510_v62, %v3510_v62  ;;  %v2190_v33 = vsel %vm1431_vm2, %v1942_v24, 0.0 }
 0x1e1   : > { %v1809_v62 = vsel %vm1431_vm2, %v3555_v7, 0.0 }
 0x1e2   : > { %v2173_v49 = vadd.f32 %v2172_v0, %v2171_v11  ;;  %v1786_v40 = vadd.f32 %v1785_v1, %v1784_v35  ;;  %v1945_v0 = vmul.f32 %v3540_v57, %v3540_v57  ;;  %v2192_v35 = vsel %vm1431_vm2, %v1943_v5, 0.0 }
 0x1e3   : > { %v1807_v11 = vsel %vm1431_vm2, %v3540_v57, 0.0  ;;  %v2194_v20 = vsel %vm1431_vm2, %v1944_v58, 0.0 }
 0x1e4   : > { %v1788_v26 = vadd.f32 %v1787_v19, %v1786_v40  ;;  %v2175_v51 = vadd.f32 %v2174_v48, %v2173_v49  ;;  %v2196_v1 = vsel %vm1431_vm2, %v1945_v0, 0.0  ;;  %v1946_v49 = vmul.f32 %v3555_v7, %v3555_v7 }
 0x1e5   : > { %v1811_v48 = vsel %vm1431_vm2, %v3535_v44, 0.0 }
 0x1e6   : > { %v2177_v29 = vadd.f32 %v2176_v52, %v2175_v51  ;;  %v1790_v27 = vadd.f32 %v1789_v31, %v1788_v26  ;;  %v2198_v26 = vsel %vm1431_vm2, %v1946_v49, 0.0  ;;  %v2200_v31 = vsel %vm1431_vm2, %v1947_v37, 0.0 }
 0x1e8   : > { %v1792_v15 = vadd.f32 %v1791_v55, %v1790_v27  ;;  %v2179_v8 = vadd.f32 %v2178_v21, %v2177_v29  ;;  %v1813_v55 = vsel %vm1431_vm2, %v3913_v6, 0.0  ;;  %v2202_v27 = vsel %vm1431_vm2, %v1948_v63, 0.0 }
 0x1ea   : > { %v2181_v18 = vadd.f32 %v2180_v34, %v2179_v8  ;;  %v1794_v47 = vadd.f32 %v1793_v43, %v1792_v15  ;;  %v2211_v43 = vshrl.u32 %v2210_v14, 7 }
 0x1ec   : > { %v1796_v53 = vadd.f32 %v1795_v10, %v1794_v47  ;;  %v2183_v36 = vadd.f32 %v2182_v25, %v2181_v18  ;;  %vm2213_vm3 = vcmp.eq.s32.totalorder %v2211_v43, 1  ;;  %vm2212_vm4 = vcmp.eq.s32.totalorder %v2211_v43, 0 }
 0x1ee   : > { %v2185_v46 = vadd.f32 %v2184_v61, %v2183_v36  ;;  %v1798_v42 = vadd.f32 %v1797_v45, %v1796_v53 }
 0x1f0   : > { %v1800_v9 = vadd.f32 %v1799_v54, %v1798_v42  ;;  %v2187_v39 = vadd.f32 %v2186_v56, %v2185_v46 }
 0x1f2   : > { %v2189_v17 = vadd.f32 %v2188_v30, %v2187_v39  ;;  %v1802_v32 = vadd.f32 %v1801_v4, %v1800_v9 }
 0x1f4   : > { %v1804_v41 = vadd.f32 %v1803_v60, %v1802_v32  ;;  %v2191_v23 = vadd.f32 %v2190_v33, %v2189_v17 }
 0x1f6   : > { %v2193_v50 = vadd.f32 %v2192_v35, %v2191_v23  ;;  %v1806_v22 = vadd.f32 %v1805_v2, %v1804_v41 }
 0x1f8   : > { %v1808_v40 = vadd.f32 %v1807_v11, %v1806_v22  ;;  %v2195_v19 = vadd.f32 %v2194_v20, %v2193_v50 }
 0x1fa   : > { %v2197_v16 = vadd.f32 %v2196_v1, %v2195_v19  ;;  %v1810_v57 = vadd.f32 %v1809_v62, %v1808_v40 }
 0x1fc   : > { %v1812_v51 = vadd.f32 %v1811_v48, %v1810_v57  ;;  %v2199_v52 = vadd.f32 %v2198_v26, %v2197_v16 }
 0x1fe   : > { %v1814_v29 = vadd.f32 %v1813_v55, %v1812_v51  ;;  %v2201_v7 = vadd.f32 %v2200_v31, %v2199_v52 }
 0x200   : > { %v1815_v21 = vrot.slane %v1814_v29, 4  ;;  %v2203_v34 = vadd.f32 %v2202_v27, %v2201_v7 }
 0x202   : > { %v1816_v44 = vadd.f32 %v1815_v21, %v1814_v29  ;;  %v2204_v38 = vrot.slane %v2203_v34, 4 }
 0x204   : > { %v1817_v15 = vrot.slane %v1816_v44, 2  ;;  %v2205_v8 = vadd.f32 %v2204_v38, %v2203_v34 }
 0x206   : > { %v1818_v59 = vadd.f32 %v1817_v15, %v1816_v44  ;;  %v2206_v13 = vrot.slane %v2205_v8, 2 }
 0x208   : > { %v2207_v18 = vadd.f32 %v2206_v13, %v2205_v8  ;;  %v1819_v47 = vrot.slane %v1818_v59, 1 }
 0x20a   : > { %v2208_v10 = vrot.slane %v2207_v18, 1  ;;  %v1820_v28 = vadd.f32 %v1819_v47, %v1818_v59 }
 0x20c   : > { %v2209_v3 = vadd.f32 %v2208_v10, %v2207_v18 }
 0x20e   : > { %v2214_v25 = vsel %vm2213_vm3, %v2209_v3, 0.0 }
 0x20f   : > { %v2215_v12 = vsel %vm2212_vm4, %v1820_v28, %v2214_v25 }
 0x210   : > { %2216 = vst.msk [vmem:[%s184_s15] sm:$0xff] %vm1431_vm2, %v2215_v12 }
 0x211 PF: > { %s14_s12 = sadd.s32 1, %s2765_s12  }
 0x212   : > { %p11_p5 = scmp.ge.s32.totalorder %s14_s12, 10  }
 0x214   :  { %13 = sbr.rel (!%p11_p5) target bundleno = 1 (0x1), region = 70 }

// kernel: conv3d_batchnorm.3
= control target key start
LH: loop header
LB: loop body
LE: loop exit
PB: predicated region body
PF: predicated region fallthrough
CT: control target
= control target key end

     0   :  { %s325_s12 = smov 0   ;;  %s348_s0 = inlined_call_operand.vmem [shape: f32[512,128], index: 0, kind: input, shape index: {}, may-alias: {0,3}]   ;;  %s349_s1 = inlined_call_operand.vmem [shape: f32[1,128], index: 1, kind: input, shape index: {}]   ;;  %s350_s2 = inlined_call_operand.vmem [shape: f32[1,128], index: 2, kind: input, shape index: {}]   ;;  %s351_s3 = inlined_call_operand.vmem [shape: f32[512,128], index: 3, kind: output, shape index: {}, may-alias: {0,3}]  }
   0x1 LB: > { %s276_s13 = sadd.s32 4294967295, %s303_s12   ;;  %p280_p0 = scmp.ge.s32.totalorder %s303_s12, 1  ;;  %s303_s12 = sphi %s325_s12, %s13_s12  }
   0x2   : > { %p138_p1 = scmp.lt.s32.totalorder %s303_s12, 9 }
   0x4   : > { %p139_p2 = pnand %p280_p0, %p138_p1 }
   0x5   : > { %s281_s14 = sshll.u32 (!%p139_p2), %s276_s13, 3  ;;  %v285_v0 = vld [vmem:[%s349_s1] ss:$0 sm:$0xff] (!%p139_p2) }
   0x6   : > { %142 = sbr.rel (%p139_p2) target bundleno = 25 (0x19), region = 32  ;;  %p163_p3 = scmp.lt.s32.totalorder (!%p139_p2), %s281_s14, 63  ;;  %v286_v1 = vld [vmem:[%s350_s2] ss:$0 sm:$0xff] (!%p139_p2) }
   0xd   : > { %s353_s14 = smov (!%p163_p3, %s281_s14), 63 }
   0xe   : > { %s282_s15 = sshll.u32 %s353_s14, 3 }
   0xf   : > { %s166_s20 = scalar_lea.vmem %s348_s0, %s282_s15  ;;  %s172_s25 = scalar_lea.vmem %s351_s3, %s282_s15 }
  0x10   : > { %v174_v2 = vld [vmem:[%s166_s20] sm:$0xff]  ;;  %v175_v3 = vld [vmem:[%s166_s20 + $0x8] sm:$0xff]  ;;  %v176_v4 = vld [vmem:[%s166_s20 + $0x10] sm:$0xff] }
  0x11   : > { %v177_v5 = vld [vmem:[%s166_s20 + $0x18] sm:$0xff]  ;;  %v178_v6 = vld [vmem:[%s166_s20 + $0x20] sm:$0xff]  ;;  %v179_v7 = vld [vmem:[%s166_s20 + $0x28] sm:$0xff]  ;;  %v189_v8 = vmul.f32 %v285_v0, %v174_v2  ;;  %v190_v9 = vmul.f32 %v285_v0, %v175_v3  ;;  %v191_v10 = vmul.f32 %v285_v0, %v176_v4 }
  0x12   : > { %v180_v11 = vld [vmem:[%s166_s20 + $0x30] sm:$0xff]  ;;  %v181_v12 = vld [vmem:[%s166_s20 + $0x38] sm:$0xff]  ;;  %v192_v13 = vmul.f32 %v285_v0, %v177_v5  ;;  %v193_v14 = vmul.f32 %v285_v0, %v178_v6  ;;  %v194_v15 = vmul.f32 %v285_v0, %v179_v7 }
  0x13   : > { %v195_v16 = vmul.f32 %v285_v0, %v180_v11  ;;  %v196_v17 = vmul.f32 %v285_v0, %v181_v12  ;;  %v204_v18 = vadd.f32 %v286_v1, %v189_v8  ;;  %v205_v19 = vadd.f32 %v286_v1, %v190_v9 }
  0x14   : > { %v206_v20 = vadd.f32 %v286_v1, %v191_v10  ;;  %v207_v21 = vadd.f32 %v286_v1, %v192_v13  ;;  %v208_v22 = vadd.f32 %v286_v1, %v193_v14  ;;  %v209_v23 = vadd.f32 %v286_v1, %v194_v15 }
  0x15   : > { %v210_v24 = vadd.f32 %v286_v1, %v195_v16  ;;  %v211_v25 = vadd.f32 %v286_v1, %v196_v17  ;;  %212 = vst [vmem:[%s172_s25] sm:$0xff] %v204_v18  ;;  %213 = vst [vmem:[%s172_s25 + $0x8] sm:$0xff] %v205_v19 }
  0x16   : > { %214 = vst [vmem:[%s172_s25 + $0x10] sm:$0xff] %v206_v20  ;;  %215 = vst [vmem:[%s172_s25 + $0x18] sm:$0xff] %v207_v21 }
  0x17   : > { %216 = vst [vmem:[%s172_s25 + $0x20] sm:$0xff] %v208_v22  ;;  %217 = vst [vmem:[%s172_s25 + $0x28] sm:$0xff] %v209_v23 }
  0x18   : > { %218 = vst [vmem:[%s172_s25 + $0x30] sm:$0xff] %v210_v24  ;;  %219 = vst [vmem:[%s172_s25 + $0x38] sm:$0xff] %v211_v25 }
  0x19 PF: > { %s13_s12 = sadd.s32 1, %s303_s12  }
  0x1a   : > { %p10_p4 = scmp.ge.s32.totalorder %s13_s12, 10  }
  0x1c   :  { %12 = sbr.rel (!%p10_p4) target bundleno = 1 (0x1), region = 62 }

</bundles_post_ra>
